<compile_context>
chip_gen: v7x
topology: tpu7x:2x2x1
jax: 0.10.0
libtpu: 0.0.40
codegen_flags: <defaults>
</compile_context>

<pallas_src>
import numpy as np
import jax
import jax.numpy as jnp
from jax.experimental import pallas as pl
from jax.experimental.pallas import tpu as pltpu


def final_score_kernel(f1_ref, f2_ref,
                       w1a_ref, w1b_ref, b1_ref,
                       w2a_ref, w2b_ref, b2a_ref, b2b_ref,
                       ws1_ref, ws2_ref, bs_ref,
                       out_ref):
    # f1_ref / f2_ref blocks: (bt, C_half, HW) -- channels on sublane, HW on lane
    bt, c_half, hw = f1_ref.shape
    inv_hw = 1.0 / hw

    x1 = f1_ref[...]                                   # (bt, C_half, HW)
    x2 = f2_ref[...]

    # --- Phase 1: adaptive avg / max pooling over the spatial (lane) axis,
    # batched over all images in the block -> (bt, C_half) rows.
    avg1 = jnp.sum(x1, axis=2) * inv_hw
    avg2 = jnp.sum(x2, axis=2) * inv_hw
    mx1 = jnp.max(x1, axis=2)
    mx2 = jnp.max(x2, axis=2)

    # --- Phase 2: CA "fus" 2-layer MLP, batched over the bt images, once per
    # pooling branch.  Row orientation (pooled rows x pre-transposed weights)
    # so no in-kernel transposes are needed.
    w1a = w1a_ref[...]            # (C_half, mid)   first-half input channels
    w1b = w1b_ref[...]            # (C_half, mid)   second-half input channels
    b1 = b1_ref[...]              # (1, mid)
    w2a = w2a_ref[...]            # (mid, C_half)   first-half output channels
    w2b = w2b_ref[...]            # (mid, C_half)   second-half output channels
    b2a = b2a_ref[...]            # (1, C_half)
    b2b = b2b_ref[...]            # (1, C_half)

    def fus(p1, p2):
        # p1, p2: (bt, C_half) pooled rows of each input half.
        h = jnp.maximum(
            jnp.dot(p1, w1a, preferred_element_type=jnp.float32)
            + jnp.dot(p2, w1b, preferred_element_type=jnp.float32) + b1, 0.0)
        ga = jnp.dot(h, w2a, preferred_element_type=jnp.float32) + b2a
        gb = jnp.dot(h, w2b, preferred_element_type=jnp.float32) + b2b
        return ga, gb                                  # (bt, C_half) each

    ga_a, gb_a = fus(avg1, avg2)
    ga_m, gb_m = fus(mx1, mx2)

    # Channel mask, split at the f1/f2 boundary: (bt, C_half) each.
    m1 = jax.nn.sigmoid(ga_a + ga_m)
    m2 = jax.nn.sigmoid(gb_a + gb_m)

    # --- Phase 3: fold the mask into the 1x1 score weights (identical math to
    # score(x * mask)), then contract the channel axis on the MXU.  The big
    # (C_half, HW) slabs are only ever read by the dot -- no VPU multiply.
    wa = ws1_ref[...] * m1                             # (bt, C_half)
    wb = ws2_ref[...] * m2                             # (bt, C_half)
    bs = bs_ref[...]                                   # (1, 1)

    # Small static unroll over the images in this block (bt <= 8).
    for b in range(bt):
        score = (jnp.dot(wa[b:b + 1, :], f1_ref[b],
                         preferred_element_type=jnp.float32)
                 + jnp.dot(wb[b:b + 1, :], f2_ref[b],
                           preferred_element_type=jnp.float32)
                 + bs)                                 # (1, HW), lane-dense
        out_ref[b] = score.astype(out_ref.dtype)


def _vmem_capacity_bytes():
    """Physical per-TensorCore VMEM; conservative fallback if query fails."""
    try:
        return int(pltpu.get_tpu_info().vmem_capacity_bytes)
    except Exception:
        return 64 << 20                                # v7x per-TC VMEM


def _pick_batch_tile(n, c_half, hw, budget_bytes, max_bt=8):
    """Fold several images into one grid step, but prefer >= 2 grid steps so
    multi-TensorCore chips can shard the 'parallel' axis across cores."""
    per_image_in = 2 * c_half * hw * 4                 # f1 + f2 bytes (f32)
    cap = max(1, min(n, max_bt, budget_bytes // max(2 * per_image_in, 1)))
    best = 1
    for d in range(1, cap + 1):
        if n % d == 0:
            best = d
    if n // best < 2:
        for d in range(best - 1, 0, -1):
            if n % d == 0 and n // d >= 2:
                return d
    return best


def final_score(f1_nchw, f2_nchw, params):
    """f1, f2: [N, 64, H, W] float32 (NCHW, as in PyTorch). Returns [N, 1, H, W]."""
    w1, b1, w2, b2, ws, bs = params                    # PyTorch-layout 1x1-conv weights
    N, C_half, H, W = f1_nchw.shape
    HW = H * W
    mid = w1.shape[0]

    # Free layout change: NCHW -> [N, C/2, HW] (no transpose, no concat).
    f1 = f1_nchw.reshape(N, C_half, HW)
    f2 = f2_nchw.reshape(N, C_half, HW)

    # Split the (tiny) weights at the f1|f2 channel boundary and pre-transpose
    # for the row-oriented in-kernel MLP (done once, outside the kernel).
    w1a_t = jnp.transpose(w1[:, :C_half])              # (C_half, mid)
    w1b_t = jnp.transpose(w1[:, C_half:])              # (C_half, mid)
    b1r = b1.reshape(1, mid)
    w2a_t = jnp.transpose(w2[:C_half, :])              # (mid, C_half)
    w2b_t = jnp.transpose(w2[C_half:, :])              # (mid, C_half)
    b2ar = b2[:C_half].reshape(1, C_half)
    b2br = b2[C_half:].reshape(1, C_half)
    ws1, ws2 = ws[:, :C_half], ws[:, C_half:]          # (1, C_half) each
    bsr = bs.reshape(1, 1)

    vmem_cap = _vmem_capacity_bytes()
    # Block-byte budget derived from the real chip: ~40 MiB on 128 MiB parts
    # (v5e/v6e), ~21 MiB on v7x's 64 MiB.
    budget = max(8 << 20, min(vmem_cap // 3, 40 << 20))
    bt = _pick_batch_tile(N, C_half, HW, budget_bytes=budget)
    grid = (N // bt,)

    x_spec = pl.BlockSpec((bt, C_half, HW), lambda n: (n, 0, 0))

    def const(arr):
        return pl.BlockSpec(arr.shape, lambda n, _r=arr.ndim: (0,) * _r)

    # Explicit scoped-VMEM request, clamped to the chip's physical capacity
    # (v7x has only 64 MiB per TensorCore); double-buffered in/out blocks.
    in_block = 2 * bt * C_half * HW * 4
    out_block = bt * HW * 4
    need = 2 * (in_block + out_block) + (2 << 20)      # + weights/headroom
    vmem_limit = int(max(min(need, vmem_cap - (8 << 20)), 16 << 20))

    out = pl.pallas_call(
        final_score_kernel,
        out_shape=jax.ShapeDtypeStruct((N, 1, HW), jnp.float32),
        grid_spec=pltpu.PrefetchScalarGridSpec(
            num_scalar_prefetch=0,
            grid=grid,
            in_specs=[
                x_spec,            # f1  (bt, C_half, HW)
                x_spec,            # f2
                const(w1a_t), const(w1b_t), const(b1r),
                const(w2a_t), const(w2b_t), const(b2ar), const(b2br),
                const(ws1), const(ws2), const(bsr),
            ],
            out_specs=pl.BlockSpec((bt, 1, HW), lambda n: (n, 0, 0)),
        ),
        compiler_params=pltpu.CompilerParams(
            dimension_semantics=("parallel",),
            vmem_limit_bytes=vmem_limit),
    )(f1, f2, w1a_t, w1b_t, b1r, w2a_t, w2b_t, b2ar, b2br, ws1, ws2, bsr)

    # [N, 1, HW] -> [N, 1, H, W] (free reshape).
    return out.reshape(N, 1, H, W)


def init_params(key, in_ch=128):
    """Deterministic synthetic weights in PyTorch 1x1-conv layout:
       w1 [mid, in_ch], b1 [mid], w2 [in_ch, mid], b2 [in_ch], ws [1, in_ch], bs [1]."""
    k1, k2, k3, k4, k5, k6 = jax.random.split(key, 6)
    mid = in_ch // 2
    w1 = jax.random.normal(k1, (mid, in_ch), jnp.float32) * (1.0 / np.sqrt(in_ch))
    b1 = 0.1 * jax.random.normal(k4, (mid,), jnp.float32)
    w2 = jax.random.normal(k2, (in_ch, mid), jnp.float32) * (1.0 / np.sqrt(mid))
    b2 = 0.1 * jax.random.normal(k5, (in_ch,), jnp.float32)
    ws = jax.random.normal(k3, (1, in_ch), jnp.float32) * (1.0 / np.sqrt(in_ch))
    bs = 0.1 * jax.random.normal(k6, (1,), jnp.float32)
    return (w1, b1, w2, b2, ws, bs)


def final_score_ref(f1, f2, params):
    """Pure-JAX reference (same math as the PyTorch module)."""
    w1, b1, w2, b2, ws, bs = params
    x = jnp.concatenate([f1, f2], axis=1)                     # [N, 128, H, W]
    N, C, H, W = x.shape
    xf = x.reshape(N, C, H * W)                               # [N, C, HW]
    avg = jnp.mean(xf, axis=2)                                # [N, C]
    mx = jnp.max(xf, axis=2)                                  # [N, C]

    def fus(v):                                               # v: [N, C]
        h = jnp.maximum(v @ w1.T + b1, 0.0)                   # [N, mid]
        return h @ w2.T + b2                                  # [N, C]

    mask = jax.nn.sigmoid(fus(avg) + fus(mx))                 # [N, C]
    xa = xf * mask[:, :, None]                                # [N, C, HW]
    sc = jnp.einsum('nch,oc->noh', xa, ws) + bs[None, :, None]  # [N, 1, HW]
    return sc.reshape(N, 1, H, W)


if __name__ == "__main__":
    key = jax.random.PRNGKey(0)
    kf1, kf2, kp = jax.random.split(key, 3)

    # Small shapes consistent with the module: CA(128) => 64 + 64 channels.
    N, C_each, H, W = 2, 64, 16, 16
    f1 = jax.random.normal(kf1, (N, C_each, H, W), jnp.float32)
    f2 = jax.random.normal(kf2, (N, C_each, H, W), jnp.float32)
    params = init_params(kp, in_ch=2 * C_each)

    out = final_score(f1, f2, params)
    out = jax.block_until_ready(out)

    ref = final_score_ref(f1, f2, params)
    assert out.shape == (N, 1, H, W)
    np.testing.assert_allclose(np.asarray(out), np.asarray(ref),
                               rtol=1e-4, atol=1e-4)
    print("KERNEL_OK")
</pallas_src>

<mosaic_0001>
module attributes {stable_mosaic.version = 11 : i64} {
  func.func @final_score_kernel(%arg0: i32, %arg1: memref<1x64x256xf32, #tpu.memory_space<vmem>>, %arg2: memref<1x64x256xf32, #tpu.memory_space<vmem>>, %arg3: memref<64x64xf32, #tpu.memory_space<vmem>>, %arg4: memref<64x64xf32, #tpu.memory_space<vmem>>, %arg5: memref<1x64xf32, #tpu.memory_space<vmem>>, %arg6: memref<64x64xf32, #tpu.memory_space<vmem>>, %arg7: memref<64x64xf32, #tpu.memory_space<vmem>>, %arg8: memref<1x64xf32, #tpu.memory_space<vmem>>, %arg9: memref<1x64xf32, #tpu.memory_space<vmem>>, %arg10: memref<1x64xf32, #tpu.memory_space<vmem>>, %arg11: memref<1x64xf32, #tpu.memory_space<vmem>>, %arg12: memref<1x1xf32, #tpu.memory_space<vmem>>, %arg13: memref<1x1x256xf32, #tpu.memory_space<vmem>>) attributes {dimension_semantics = [#tpu.dimension_semantics<parallel>], iteration_bounds = array<i64: 2>, scalar_prefetch = 0 : i64, scratch_operands = 0 : i64, tpu.core_type = #tpu.core_type<tc>, window_params = [{transform_indices = @transform_0, window_bounds = array<i64: 1, 64, 256>}, {transform_indices = @transform_1, window_bounds = array<i64: 1, 64, 256>}, {pipeline_mode = #tpu.pipeline_mode<synchronous>, transform_indices = @transform_2, window_bounds = array<i64: 64, 64>}, {pipeline_mode = #tpu.pipeline_mode<synchronous>, transform_indices = @transform_3, window_bounds = array<i64: 64, 64>}, {pipeline_mode = #tpu.pipeline_mode<synchronous>, transform_indices = @transform_4, window_bounds = array<i64: 1, 64>}, {pipeline_mode = #tpu.pipeline_mode<synchronous>, transform_indices = @transform_5, window_bounds = array<i64: 64, 64>}, {pipeline_mode = #tpu.pipeline_mode<synchronous>, transform_indices = @transform_6, window_bounds = array<i64: 64, 64>}, {pipeline_mode = #tpu.pipeline_mode<synchronous>, transform_indices = @transform_7, window_bounds = array<i64: 1, 64>}, {pipeline_mode = #tpu.pipeline_mode<synchronous>, transform_indices = @transform_8, window_bounds = array<i64: 1, 64>}, {pipeline_mode = #tpu.pipeline_mode<synchronous>, transform_indices = @transform_9, window_bounds = array<i64: 1, 64>}, {pipeline_mode = #tpu.pipeline_mode<synchronous>, transform_indices = @transform_10, window_bounds = array<i64: 1, 64>}, {pipeline_mode = #tpu.pipeline_mode<synchronous>, transform_indices = @transform_11, window_bounds = array<i64: 1, 1>}, {transform_indices = @transform_12, window_bounds = array<i64: 1, 1, 256>}]} {
    %c0 = arith.constant 0 : index
    %c0_0 = arith.constant 0 : index
    %c0_1 = arith.constant 0 : index
    %0 = vector.load %arg1[%c0, %c0_0, %c0_1] : memref<1x64x256xf32, #tpu.memory_space<vmem>>, vector<1x64x256xf32>
    %c0_2 = arith.constant 0 : index
    %c0_3 = arith.constant 0 : index
    %c0_4 = arith.constant 0 : index
    %1 = vector.load %arg2[%c0_2, %c0_3, %c0_4] : memref<1x64x256xf32, #tpu.memory_space<vmem>>, vector<1x64x256xf32>
    %cst = arith.constant dense<0.000000e+00> : vector<1x64xf32>
    %2 = vector.multi_reduction <add>, %0, %cst [2] : vector<1x64x256xf32> to vector<1x64xf32>
    %cst_5 = arith.constant 3.906250e-03 : f32
    %3 = vector.broadcast %cst_5 : f32 to vector<1x64xf32>
    %4 = arith.mulf %2, %3 : vector<1x64xf32>
    %cst_6 = arith.constant dense<0.000000e+00> : vector<1x64xf32>
    %5 = vector.multi_reduction <add>, %1, %cst_6 [2] : vector<1x64x256xf32> to vector<1x64xf32>
    %cst_7 = arith.constant 3.906250e-03 : f32
    %6 = vector.broadcast %cst_7 : f32 to vector<1x64xf32>
    %7 = arith.mulf %5, %6 : vector<1x64xf32>
    %cst_8 = arith.constant dense<0xFF800000> : vector<1x64xf32>
    %8 = vector.multi_reduction <maximumf>, %0, %cst_8 [2] : vector<1x64x256xf32> to vector<1x64xf32>
    %cst_9 = arith.constant dense<0xFF800000> : vector<1x64xf32>
    %9 = vector.multi_reduction <maximumf>, %1, %cst_9 [2] : vector<1x64x256xf32> to vector<1x64xf32>
    %c0_10 = arith.constant 0 : index
    %c0_11 = arith.constant 0 : index
    %10 = vector.load %arg3[%c0_10, %c0_11] : memref<64x64xf32, #tpu.memory_space<vmem>>, vector<64x64xf32>
    %c0_12 = arith.constant 0 : index
    %c0_13 = arith.constant 0 : index
    %11 = vector.load %arg4[%c0_12, %c0_13] : memref<64x64xf32, #tpu.memory_space<vmem>>, vector<64x64xf32>
    %c0_14 = arith.constant 0 : index
    %c0_15 = arith.constant 0 : index
    %12 = vector.load %arg5[%c0_14, %c0_15] : memref<1x64xf32, #tpu.memory_space<vmem>>, vector<1x64xf32>
    %c0_16 = arith.constant 0 : index
    %c0_17 = arith.constant 0 : index
    %13 = vector.load %arg6[%c0_16, %c0_17] : memref<64x64xf32, #tpu.memory_space<vmem>>, vector<64x64xf32>
    %c0_18 = arith.constant 0 : index
    %c0_19 = arith.constant 0 : index
    %14 = vector.load %arg7[%c0_18, %c0_19] : memref<64x64xf32, #tpu.memory_space<vmem>>, vector<64x64xf32>
    %c0_20 = arith.constant 0 : index
    %c0_21 = arith.constant 0 : index
    %15 = vector.load %arg8[%c0_20, %c0_21] : memref<1x64xf32, #tpu.memory_space<vmem>>, vector<1x64xf32>
    %c0_22 = arith.constant 0 : index
    %c0_23 = arith.constant 0 : index
    %16 = vector.load %arg9[%c0_22, %c0_23] : memref<1x64xf32, #tpu.memory_space<vmem>>, vector<1x64xf32>
    %cst_24 = arith.constant dense<0.000000e+00> : vector<1x64xf32>
    %17 = tpu.matmul %4, %10, %cst_24 {dimension_numbers = #tpu.dot_dimension_numbers<[1], [0], [0], [1], [0, 0, 1, 1], [], []>} : vector<1x64xf32>, vector<64x64xf32>, vector<1x64xf32> -> vector<1x64xf32>
    %cst_25 = arith.constant dense<0.000000e+00> : vector<1x64xf32>
    %18 = tpu.matmul %7, %11, %cst_25 {dimension_numbers = #tpu.dot_dimension_numbers<[1], [0], [0], [1], [0, 0, 1, 1], [], []>} : vector<1x64xf32>, vector<64x64xf32>, vector<1x64xf32> -> vector<1x64xf32>
    %19 = arith.addf %17, %18 : vector<1x64xf32>
    %20 = arith.addf %19, %12 : vector<1x64xf32>
    %cst_26 = arith.constant 0.000000e+00 : f32
    %21 = vector.broadcast %cst_26 : f32 to vector<1x64xf32>
    %22 = arith.maximumf %20, %21 : vector<1x64xf32>
    %cst_27 = arith.constant dense<0.000000e+00> : vector<1x64xf32>
    %23 = tpu.matmul %22, %13, %cst_27 {dimension_numbers = #tpu.dot_dimension_numbers<[1], [0], [0], [1], [0, 0, 1, 1], [], []>} : vector<1x64xf32>, vector<64x64xf32>, vector<1x64xf32> -> vector<1x64xf32>
    %24 = arith.addf %23, %15 : vector<1x64xf32>
    %cst_28 = arith.constant dense<0.000000e+00> : vector<1x64xf32>
    %25 = tpu.matmul %22, %14, %cst_28 {dimension_numbers = #tpu.dot_dimension_numbers<[1], [0], [0], [1], [0, 0, 1, 1], [], []>} : vector<1x64xf32>, vector<64x64xf32>, vector<1x64xf32> -> vector<1x64xf32>
    %26 = arith.addf %25, %16 : vector<1x64xf32>
    %cst_29 = arith.constant dense<0.000000e+00> : vector<1x64xf32>
    %27 = tpu.matmul %8, %10, %cst_29 {dimension_numbers = #tpu.dot_dimension_numbers<[1], [0], [0], [1], [0, 0, 1, 1], [], []>} : vector<1x64xf32>, vector<64x64xf32>, vector<1x64xf32> -> vector<1x64xf32>
    %cst_30 = arith.constant dense<0.000000e+00> : vector<1x64xf32>
    %28 = tpu.matmul %9, %11, %cst_30 {dimension_numbers = #tpu.dot_dimension_numbers<[1], [0], [0], [1], [0, 0, 1, 1], [], []>} : vector<1x64xf32>, vector<64x64xf32>, vector<1x64xf32> -> vector<1x64xf32>
    %29 = arith.addf %27, %28 : vector<1x64xf32>
    %30 = arith.addf %29, %12 : vector<1x64xf32>
    %cst_31 = arith.constant 0.000000e+00 : f32
    %31 = vector.broadcast %cst_31 : f32 to vector<1x64xf32>
    %32 = arith.maximumf %30, %31 : vector<1x64xf32>
    %cst_32 = arith.constant dense<0.000000e+00> : vector<1x64xf32>
    %33 = tpu.matmul %32, %13, %cst_32 {dimension_numbers = #tpu.dot_dimension_numbers<[1], [0], [0], [1], [0, 0, 1, 1], [], []>} : vector<1x64xf32>, vector<64x64xf32>, vector<1x64xf32> -> vector<1x64xf32>
    %34 = arith.addf %33, %15 : vector<1x64xf32>
    %cst_33 = arith.constant dense<0.000000e+00> : vector<1x64xf32>
    %35 = tpu.matmul %32, %14, %cst_33 {dimension_numbers = #tpu.dot_dimension_numbers<[1], [0], [0], [1], [0, 0, 1, 1], [], []>} : vector<1x64xf32>, vector<64x64xf32>, vector<1x64xf32> -> vector<1x64xf32>
    %36 = arith.addf %35, %16 : vector<1x64xf32>
    %37 = arith.addf %24, %34 : vector<1x64xf32>
    %38 = arith.negf %37 : vector<1x64xf32>
    %39 = math.exp %38 : vector<1x64xf32>
    %cst_34 = arith.constant 1.000000e+00 : f32
    %40 = vector.broadcast %cst_34 : f32 to vector<1x64xf32>
    %41 = arith.addf %40, %39 : vector<1x64xf32>
    %42 = arith.divf %40, %41 : vector<1x64xf32>
    %43 = arith.addf %26, %36 : vector<1x64xf32>
    %44 = arith.negf %43 : vector<1x64xf32>
    %45 = math.exp %44 : vector<1x64xf32>
    %cst_35 = arith.constant 1.000000e+00 : f32
    %46 = vector.broadcast %cst_35 : f32 to vector<1x64xf32>
    %47 = arith.addf %46, %45 : vector<1x64xf32>
    %48 = arith.divf %46, %47 : vector<1x64xf32>
    %c0_36 = arith.constant 0 : index
    %c0_37 = arith.constant 0 : index
    %49 = vector.load %arg10[%c0_36, %c0_37] : memref<1x64xf32, #tpu.memory_space<vmem>>, vector<1x64xf32>
    %50 = arith.mulf %49, %42 : vector<1x64xf32>
    %c0_38 = arith.constant 0 : index
    %c0_39 = arith.constant 0 : index
    %51 = vector.load %arg11[%c0_38, %c0_39] : memref<1x64xf32, #tpu.memory_space<vmem>>, vector<1x64xf32>
    %52 = arith.mulf %51, %48 : vector<1x64xf32>
    %c0_40 = arith.constant 0 : index
    %c0_41 = arith.constant 0 : index
    %53 = vector.load %arg12[%c0_40, %c0_41] : memref<1x1xf32, #tpu.memory_space<vmem>>, vector<1x1xf32>
    %c0_42 = arith.constant 0 : index
    %c0_43 = arith.constant 0 : index
    %c0_44 = arith.constant 0 : index
    %54 = vector.load %arg1[%c0_42, %c0_43, %c0_44] : memref<1x64x256xf32, #tpu.memory_space<vmem>>, vector<1x64x256xf32>
    %55 = vector.shape_cast %54 : vector<1x64x256xf32> to vector<64x256xf32>
    %cst_45 = arith.constant dense<0.000000e+00> : vector<1x256xf32>
    %56 = tpu.matmul %50, %55, %cst_45 {dimension_numbers = #tpu.dot_dimension_numbers<[1], [0], [0], [1], [0, 0, 1, 1], [], []>} : vector<1x64xf32>, vector<64x256xf32>, vector<1x256xf32> -> vector<1x256xf32>
    %c0_46 = arith.constant 0 : index
    %c0_47 = arith.constant 0 : index
    %c0_48 = arith.constant 0 : index
    %57 = vector.load %arg2[%c0_46, %c0_47, %c0_48] : memref<1x64x256xf32, #tpu.memory_space<vmem>>, vector<1x64x256xf32>
    %58 = vector.shape_cast %57 : vector<1x64x256xf32> to vector<64x256xf32>
    %cst_49 = arith.constant dense<0.000000e+00> : vector<1x256xf32>
    %59 = tpu.matmul %52, %58, %cst_49 {dimension_numbers = #tpu.dot_dimension_numbers<[1], [0], [0], [1], [0, 0, 1, 1], [], []>} : vector<1x64xf32>, vector<64x256xf32>, vector<1x256xf32> -> vector<1x256xf32>
    %60 = arith.addf %56, %59 : vector<1x256xf32>
    %61 = vector.broadcast %53 : vector<1x1xf32> to vector<1x256xf32>
    %62 = arith.addf %60, %61 : vector<1x256xf32>
    %c0_50 = arith.constant 0 : index
    %c0_51 = arith.constant 0 : index
    %c0_52 = arith.constant 0 : index
    %63 = vector.load %arg13[%c0_50, %c0_51, %c0_52] : memref<1x1x256xf32, #tpu.memory_space<vmem>>, vector<1x1x256xf32>
    %64 = vector.shape_cast %63 : vector<1x1x256xf32> to vector<1x256xf32>
    %65 = vector.shape_cast %62 : vector<1x256xf32> to vector<1x1x256xf32>
    tpu.vector_store %arg13[%c0_50, %c0_51, %c0_52], %65 {strides = array<i32>} : memref<1x1x256xf32, #tpu.memory_space<vmem>>, vector<1x1x256xf32>,
    return
  }
  func.func @transform_0(%arg0: i32) -> (i32, i32, i32) {
    %c0_i32 = arith.constant 0 : i32
    %c0_i32_0 = arith.constant 0 : i32
    %c0_i32_1 = arith.constant 0 : i32
    return %arg0, %c0_i32, %c0_i32_0 : i32, i32, i32
  }
  func.func @transform_1(%arg0: i32) -> (i32, i32, i32) {
    %c0_i32 = arith.constant 0 : i32
    %c0_i32_0 = arith.constant 0 : i32
    %c0_i32_1 = arith.constant 0 : i32
    return %arg0, %c0_i32, %c0_i32_0 : i32, i32, i32
  }
  func.func @transform_2(%arg0: i32) -> (i32, i32) {
    %c0_i32 = arith.constant 0 : i32
    %c0_i32_0 = arith.constant 0 : i32
    %c0_i32_1 = arith.constant 0 : i32
    return %c0_i32, %c0_i32_0 : i32, i32
  }
  func.func @transform_3(%arg0: i32) -> (i32, i32) {
    %c0_i32 = arith.constant 0 : i32
    %c0_i32_0 = arith.constant 0 : i32
    %c0_i32_1 = arith.constant 0 : i32
    return %c0_i32, %c0_i32_0 : i32, i32
  }
  func.func @transform_4(%arg0: i32) -> (i32, i32) {
    %c0_i32 = arith.constant 0 : i32
    %c0_i32_0 = arith.constant 0 : i32
    %c0_i32_1 = arith.constant 0 : i32
    return %c0_i32, %c0_i32_0 : i32, i32
  }
  func.func @transform_5(%arg0: i32) -> (i32, i32) {
    %c0_i32 = arith.constant 0 : i32
    %c0_i32_0 = arith.constant 0 : i32
    %c0_i32_1 = arith.constant 0 : i32
    return %c0_i32, %c0_i32_0 : i32, i32
  }
  func.func @transform_6(%arg0: i32) -> (i32, i32) {
    %c0_i32 = arith.constant 0 : i32
    %c0_i32_0 = arith.constant 0 : i32
    %c0_i32_1 = arith.constant 0 : i32
    return %c0_i32, %c0_i32_0 : i32, i32
  }
  func.func @transform_7(%arg0: i32) -> (i32, i32) {
    %c0_i32 = arith.constant 0 : i32
    %c0_i32_0 = arith.constant 0 : i32
    %c0_i32_1 = arith.constant 0 : i32
    return %c0_i32, %c0_i32_0 : i32, i32
  }
  func.func @transform_8(%arg0: i32) -> (i32, i32) {
    %c0_i32 = arith.constant 0 : i32
    %c0_i32_0 = arith.constant 0 : i32
    %c0_i32_1 = arith.constant 0 : i32
    return %c0_i32, %c0_i32_0 : i32, i32
  }
  func.func @transform_9(%arg0: i32) -> (i32, i32) {
    %c0_i32 = arith.constant 0 : i32
    %c0_i32_0 = arith.constant 0 : i32
    %c0_i32_1 = arith.constant 0 : i32
    return %c0_i32, %c0_i32_0 : i32, i32
  }
  func.func @transform_10(%arg0: i32) -> (i32, i32) {
    %c0_i32 = arith.constant 0 : i32
    %c0_i32_0 = arith.constant 0 : i32
    %c0_i32_1 = arith.constant 0 : i32
    return %c0_i32, %c0_i32_0 : i32, i32
  }
  func.func @transform_11(%arg0: i32) -> (i32, i32) {
    %c0_i32 = arith.constant 0 : i32
    %c0_i32_0 = arith.constant 0 : i32
    %c0_i32_1 = arith.constant 0 : i32
    return %c0_i32, %c0_i32_0 : i32, i32
  }
  func.func @transform_12(%arg0: i32) -> (i32, i32, i32) {
    %c0_i32 = arith.constant 0 : i32
    %c0_i32_0 = arith.constant 0 : i32
    %c0_i32_1 = arith.constant 0 : i32
    return %arg0, %c0_i32, %c0_i32_0 : i32, i32, i32
  }
}

</mosaic_0001>

<bundles_post_ra>
// kernel: tpu_custom_call.1
= control target key start
LH: loop header
LB: loop body
LE: loop exit
PB: predicated region body
PF: predicated region fallthrough
CT: control target
= control target key end

     0   :  { %s3499_s0 = inlined_call_operand.hbm [shape: f32[2,64,256], index: 0, kind: input, shape index: {}]   ;;  %s3500_s1 = inlined_call_operand.hbm [shape: f32[2,64,256], index: 1, kind: input, shape index: {}]   ;;  %s3501_s2 = inlined_call_operand.hbm [shape: f32[64,64], index: 2, kind: input, shape index: {}]   ;;  %s3502_s3 = inlined_call_operand.hbm [shape: f32[64,64], index: 3, kind: input, shape index: {}]   ;;  %s3503_s4 = inlined_call_operand.vmem [shape: f32[1,64], index: 4, kind: input, shape index: {}]   ;;  %s3504_s5 = inlined_call_operand.hbm [shape: f32[64,64], index: 5, kind: input, shape index: {}]   ;;  %s3505_s6 = inlined_call_operand.hbm [shape: f32[64,64], index: 6, kind: input, shape index: {}]   ;;  %s3506_s7 = inlined_call_operand.vmem [shape: f32[1,64], index: 7, kind: input, shape index: {}]   ;;  %s3507_s8 = inlined_call_operand.vmem [shape: f32[1,64], index: 8, kind: input, shape index: {}]   ;;  %s3508_s9 = inlined_call_operand.vmem [shape: f32[1,64], index: 9, kind: input, shape index: {}]   ;;  %s3509_s10 = inlined_call_operand.vmem [shape: f32[1,64], index: 10, kind: input, shape index: {}]   ;;  %s3510_s11 = inlined_call_operand.<no memory space> [shape: f32[1,1], index: 11, kind: input, shape index: {}]   ;;  %s3511_s12 = inlined_call_operand.hbm [shape: f32[2,1,256], index: 12, kind: output, shape index: {}]  }
   0x1   :  { %3534 = sst [smem:[#allocation33_spill]] %s3499_s0  ;;  %v17_v0 = vstv %s3510_s11 }
   0x2   :  { %3535 = sst [smem:[#allocation34_spill]] %s3501_s2  ;;  %18 = vst [vmem:[#allocation2] sm:$0x1] %v17_v0 }
   0x3   :  { %3536 = sst [smem:[#allocation35_spill]] %s3502_s3 }
   0x4   :  { %3537 = sst [smem:[#allocation36_spill]] %s3508_s9 }
   0x5   :  { %3538 = sst [smem:[#allocation37_spill]] %s3509_s10 }
   0x6   :  { %3539 = sst [smem:[#allocation38_spill]] %s3511_s12 }
   0x7   :  { %19 = vsyncpa [#allocation4], 0 }
   0x8   :  { %21 = vsyncpa [#allocation4 + $0x1], 0 }
   0x9   :  { %22 = vsyncpa [#allocation7], 0 }
   0xa   :  { %24 = vsyncpa [#allocation7 + $0x1], 0 }
   0xb   :  { %25 = vsyncpa [#allocation10], 0 }
   0xc   :  { %26 = vsyncpa [#allocation13], 0 }
   0xd   :  { %27 = vsyncpa [#allocation5], 0 }
   0xe   :  { %29 = vsyncpa [#allocation5 + $0x1], 0  ;;  %s2694_s23 = smov 0   ;;  %s2696_s24 = smov 0  }
   0xf   :  { %s2698_s25 = smov 0   ;;  %s2700_s26 = smov 0  }
  0x10 LB: > { %3540 = sst [smem:[#allocation21_spill]] %s2596_s23  ;;  %s2715_s11 = sadd.s32 4294967295, %s2608_s26   ;;  %s2608_s26 = sphi %s2700_s26, %s3602_s26   ;;  %s2604_s25 = sphi %s2698_s25, %s3601_s25   ;;  %s2600_s24 = sphi %s2696_s24, %s3600_s24   ;;  %s2596_s23 = sphi %s2694_s23, %s3599_s23  }
  0x11   : > { %s1841_s27 = sadd.s32 4294967294, %s2608_s26   ;;  %p55_p0 = scmp.ne.s32.totalorder %s2600_s24, %s2596_s23 }
  0x12   : > { %p3513_p1 = scmp.eq.s32.totalorder %s2715_s11, 0  ;;  %p321_p3 = scmp.eq.s32.totalorder %s1841_s27, 1 }
  0x13   : > { %p1842_p5 = scmp.ge.s32.totalorder %s2608_s26, 1  ;;  %p328_p7 = scmp.lt.s32.totalorder %s2608_s26, 3 }
  0x14   : > { %p2724_p4 = por %p3513_p1, %p55_p0  ;;  %p2729_p6 = por %p321_p3, %p55_p0 }
  0x15   : > { %p2734_p8 = pnand %p1842_p5, %p328_p7  ;;  %s2610_s13 = smov [#allocation8]  }
  0x16   : > { %s3541_s28 = scalar_select %p2724_p4, 1, 0 }
  0x17   : > { %s3542_s29 = scalar_select %p2729_p6, 1, 0 }
  0x18   : > { %s3544_s30 = scalar_select %p2734_p8, 1, 0 }
  0x19   : > { %3543 = sst [smem:[#allocation22_spill]] %s3542_s29  ;;  %s340_s14 = sshll.u32 %s2610_s13, 4  ;;  %s2738_s14 = int_to_ptr.vmem [resolvable:$true] %s340_s14 }
  0x1a   : > { %p2266_p9 = pneg %p2734_p8  ;;  %s2611_s16 = smov [#allocation9]  }
  0x1b   : > { %s353_s17 = sshll.u32 %s2611_s16, 4  ;;  %s2612_s18 = smov [#allocation11]   ;;  %s2749_s17 = int_to_ptr.vmem [resolvable:$true] %s353_s17 }
  0x1c   : > { %p2745_p11 = pnand %p2266_p9, %p3513_p1  ;;  %s2751_s19 = sshll.u32 %s2612_s18, 4  ;;  %s370_s19 = int_to_ptr.vmem [resolvable:$true] %s2751_s19 }
  0x1d   : > { %s3546_s2 = sld [smem:[#allocation34_spill]] }
  0x1e   : > { %p2761_p13 = pneg %p2745_p11 }
  0x23   : > { %s2354_s22 = scalar_lea.hbm %s3546_s2, 1024 }
  0x24   : > { %p2355_p12 = scmp.ne.s32.totalorder %s3546_s2, %s2354_s22  ;;  %p2361_p5 = scmp.lt.u32.totalorder %s2354_s22, %s3546_s2 }
  0x26   : > { %p2357_p0 = pnand %p2761_p13, %p2355_p12 }
  0x28   : > { %p2358_p3 = pneg %p2357_p0 }
  0x2a   : > { %p2363_p7 = pnand %p2361_p5, %p2358_p3 }
  0x2c   : > { %2366 = shalt.err (!%p2363_p7)
}
  0x2d   : > { %s2367_s20 = scalar_lea.vmem %s2738_s14, 1024  ;;  %p2375_p2 = scmp.lt.s32.totalorder %s2738_s14, %s2738_s14 }
  0x2e   : > { %p2368_p9 = scmp.ne.s32.totalorder %s2738_s14, %s2367_s20  ;;  %p2376_p6 = scmp.lt.s32.totalorder %s2367_s20, %s2367_s20 }
  0x30   : > { %p2370_p10 = pnand %p2368_p9, %p2761_p13  ;;  %p2377_p12 = por %p2376_p6, %p2375_p2 }
  0x32   : > { %p2371_p1 = pneg %p2370_p10 }
  0x34   : > { %p2378_p0 = pnand %p2377_p12, %p2371_p1 }
  0x36   : > { %2381 = shalt.err (!%p2378_p0)
}
  0x37   : > { %s2613_s21 = smov 128   ;;  %s2614_s22 = smov 8  }
  0x38   : > { %2269 = dma.hbm_to_vmem [thread:$0]  (!%p2745_p11), %s3546_s2, 1024, %s2738_s14, [#allocation7], %s2613_s21, %s2613_s21, %s2614_s22  }
  0x39   : > { %s3548_s3 = sld [smem:[#allocation35_spill]] }
  0x3f   : > { %s2382_s20 = scalar_lea.hbm %s3548_s3, 1024 }
  0x40   : > { %p2383_p1 = scmp.ne.s32.totalorder %s3548_s3, %s2382_s20  ;;  %p2389_p10 = scmp.lt.u32.totalorder %s2382_s20, %s3548_s3 }
  0x42   : > { %p2385_p2 = pnand %p2383_p1, %p2761_p13 }
  0x44   : > { %p2386_p6 = pneg %p2385_p2 }
  0x46   : > { %p2391_p3 = pnand %p2389_p10, %p2386_p6 }
  0x48   : > { %2394 = shalt.err (!%p2391_p3)
}
  0x49   : > { %s2395_s14 = scalar_lea.vmem %s2749_s17, 1024  ;;  %p2403_p12 = scmp.lt.s32.totalorder %s2749_s17, %s2749_s17 }
  0x4a   : > { %p2396_p5 = scmp.ne.s32.totalorder %s2749_s17, %s2395_s14  ;;  %p2404_p0 = scmp.lt.s32.totalorder %s2395_s14, %s2395_s14 }
  0x4c   : > { %p2398_p7 = pnand %p2396_p5, %p2761_p13  ;;  %p2405_p1 = por %p2404_p0, %p2403_p12 }
  0x4e   : > { %p2399_p9 = pneg %p2398_p7 }
  0x50   : > { %p2406_p2 = pnand %p2405_p1, %p2399_p9 }
  0x52   : > { %2409 = shalt.err (!%p2406_p2)
}
  0x53   : > { %2272 = dma.hbm_to_vmem [thread:$0]  (!%p2745_p11), %s3548_s3, 1024, %s2749_s17, [#allocation10], %s2613_s21, %s2613_s21, %s2614_s22  }
  0x54   : > { %s2410_s27 = scalar_lea.hbm %s3504_s5, 1024 }
  0x55   : > { %p2411_p6 = scmp.ne.s32.totalorder %s3504_s5, %s2410_s27  ;;  %p2417_p5 = scmp.lt.u32.totalorder %s2410_s27, %s3504_s5 }
  0x57   : > { %p2413_p10 = pnand %p2411_p6, %p2761_p13 }
  0x59   : > { %p2414_p3 = pneg %p2413_p10 }
  0x5b   : > { %p2419_p7 = pnand %p2417_p5, %p2414_p3 }
  0x5d   : > { %2422 = shalt.err (!%p2419_p7)
}
  0x5e   : > { %s2423_s14 = scalar_lea.vmem %s370_s19, 1024  ;;  %p2431_p1 = scmp.lt.s32.totalorder %s370_s19, %s370_s19 }
  0x5f   : > { %p2424_p9 = scmp.ne.s32.totalorder %s370_s19, %s2423_s14  ;;  %p2432_p2 = scmp.lt.s32.totalorder %s2423_s14, %s2423_s14 }
  0x61   : > { %p2426_p12 = pnand %p2424_p9, %p2761_p13  ;;  %p2433_p4 = por %p2432_p2, %p2431_p1 }
  0x63   : > { %p2427_p0 = pneg %p2426_p12 }
  0x65   : > { %p2434_p8 = pnand %p2433_p4, %p2427_p0 }
  0x67   : > { %2437 = shalt.err (!%p2434_p8)
}
  0x68   : > { %2275 = dma.hbm_to_vmem [thread:$0]  (!%p2745_p11), %s3504_s5, 1024, %s370_s19, [#allocation10], %s2613_s21, %s2613_s21, %s2614_s22  }
  0x69   : > { %s2615_s10 = smov [#allocation12]   ;;  %s2438_s13 = scalar_lea.hbm %s3505_s6, 1024 }
  0x6a   : > { %s382_s12 = sshll.u32 %s2615_s10, 4  ;;  %p2439_p4 = scmp.ne.s32.totalorder %s3505_s6, %s2438_s13  ;;  %s383_s12 = int_to_ptr.vmem [resolvable:$true] %s382_s12 }
  0x6b   : > { %p2445_p10 = scmp.lt.u32.totalorder %s2438_s13, %s3505_s6 }
  0x6c   : > { %p2441_p8 = pnand %p2439_p4, %p2761_p13 }
  0x6e   : > { %p2442_p6 = pneg %p2441_p8 }
  0x70   : > { %p2447_p3 = pnand %p2445_p10, %p2442_p6 }
  0x72   : > { %2450 = shalt.err (!%p2447_p3)
}
  0x73   : > { %s2451_s19 = scalar_lea.vmem %s383_s12, 1024  ;;  %p2459_p12 = scmp.lt.s32.totalorder %s383_s12, %s383_s12 }
  0x74   : > { %p2452_p5 = scmp.ne.s32.totalorder %s383_s12, %s2451_s19  ;;  %p2460_p0 = scmp.lt.s32.totalorder %s2451_s19, %s2451_s19 }
  0x76   : > { %p2454_p7 = pnand %p2452_p5, %p2761_p13  ;;  %p2461_p1 = por %p2460_p0, %p2459_p12 }
  0x78   : > { %p2455_p9 = pneg %p2454_p7 }
  0x7a   : > { %p2462_p2 = pnand %p2461_p1, %p2455_p9 }
  0x7c   : > { %2465 = shalt.err (!%p2462_p2)
}
  0x7d   : > { %2278 = dma.hbm_to_vmem [thread:$0]  (!%p2745_p11), %s3505_s6, 1024, %s383_s12, [#allocation13], %s2613_s21, %s2613_s21, %s2614_s22  }
  0x7e   : > { %s2855_s29 = sadd.s32 1, %s2608_s26   ;;  %s42_s15 = sadd.s32 1, %s2604_s25 }
  0x7f   : > { %s39_s10 = ssub.s32 %s2608_s26, %s2855_s29  ;;  %p49_p13 = scmp.ne.s32.totalorder %s2604_s25, %s2600_s24 }
  0x80   : > { %p40_p4 = scmp.eq.s32.totalorder %s39_s10, 0  ;;  %p50_p8 = scmp.eq.s32.totalorder %s2608_s26, 0 }
  0x81   : > { %p3549_p6 = scmp.eq.s32.totalorder %s2715_s11, 1  ;;  %p2294_p3 = scmp.lt.s32.totalorder %s2608_s26, 2 }
  0x82   : > { %s2871_s27 = scalar_select %p40_p4, %s2604_s25, %s42_s15  }
  0x83   : > { %p2865_p10 = por %p3549_p6, %p49_p13  ;;  %p51_p5 = por %p50_p8, %p49_p13 }
  0x84   : > { %s411_s13 = sand.u32 1, %s2604_s25   ;;  %s1879_s21 = sshll.u32 %s2608_s26, 11 }
  0x85   : > { %s2874_s16 = sshll.u32 %s411_s13, 7  ;;  %s3551_s0 = sld [smem:[#allocation33_spill]] }
  0x86   : > { %s415_s20 = scalar_lea.vmem [#allocation3], %s2874_s16  ;;  %p2887_p11 = pnand %p2294_p3, %p51_p5 }
  0x87   : > { %s422_s14 = sshll.u32 %s415_s20, 4  ;;  %s2891_s17 = scalar_lea.sflag [#allocation4], %s411_s13  ;;  %s2885_s14 = int_to_ptr.vmem [resolvable:$true] %s422_s14 }
  0x88   : > { %p2468_p9 = pneg %p2887_p11 }
  0x8b   : > { %s2882_s18 = scalar_lea.hbm %s3551_s0, %s1879_s21  ;;  %s2471_s22 = scalar_lea.hbm %s3551_s0, 4096 }
  0x8c   : > { %s2466_s9 = scalar_lea.hbm %s2882_s18, 2048  ;;  %p2472_p1 = scmp.lt.u32.totalorder %s2882_s18, %s3551_s0 }
  0x8d   : > { %p2467_p7 = scmp.ne.s32.totalorder %s2882_s18, %s2466_s9  ;;  %p2473_p2 = scmp.lt.u32.totalorder %s2471_s22, %s2466_s9 }
  0x8e   : > { %p2475_p4 = scmp.lt.u32.totalorder %s2466_s9, %s2882_s18 }
  0x8f   : > { %p2469_p12 = pnand %p2468_p9, %p2467_p7  ;;  %p2474_p13 = por %p2473_p2, %p2472_p1 }
  0x91   : > { %p2470_p0 = pneg %p2469_p12  ;;  %p2476_p8 = por %p2475_p4, %p2474_p13 }
  0x93   : > { %p2477_p6 = pnand %p2476_p8, %p2470_p0 }
  0x95   : > { %2480 = shalt.err (!%p2477_p6)
}
  0x96   : > { %s2481_s13 = scalar_lea.vmem %s2885_s14, 2048  ;;  %s2616_s15 = smov [#allocation3]  }
  0x97   : > { %p2482_p3 = scmp.ne.s32.totalorder %s2885_s14, %s2481_s13  ;;  %s2486_s10 = sshll.u32 %s2616_s15, 4  ;;  %s2487_s10 = int_to_ptr.vmem [resolvable:$false] %s2486_s10 }
  0x98   : > { %s2488_s12 = scalar_lea.vmem %s2487_s10, 4096  ;;  %p2489_p12 = scmp.lt.s32.totalorder %s2885_s14, %s2487_s10 }
  0x99   : > { %p2484_p5 = pnand %p2482_p3, %p2468_p9  ;;  %p2490_p1 = scmp.lt.s32.totalorder %s2488_s12, %s2481_s13 }
  0x9b   : > { %p2485_p7 = pneg %p2484_p5  ;;  %p2491_p2 = por %p2490_p1, %p2489_p12 }
  0x9d   : > { %p2492_p13 = pnand %p2491_p2, %p2485_p7 }
  0x9f   : > { %2495 = shalt.err (!%p2492_p13)
}
  0xa0   : > { %s2617_s9 = smov 256   ;;  %s2618_s22 = smov 16  }
  0xa1   : > { %2282 = dma.hbm_to_vmem [thread:$0]  (!%p2887_p11), %s2882_s18, 2048, %s2885_s14, %s2891_s17, %s2617_s9, %s2617_s9, %s2618_s22  }
  0xa2   : > { %s2927_s15 = scalar_lea.hbm %s3500_s1, %s1879_s21  ;;  %s436_s10 = scalar_lea.vmem [#allocation6], %s2874_s16 }
  0xa3   : > { %s443_s12 = sshll.u32 %s436_s10, 4  ;;  %s432_s0 = sand.u32 1, %s2608_s26   ;;  %s2930_s12 = int_to_ptr.vmem [resolvable:$true] %s443_s12 }
  0xa4   : > { %s2933_s2 = scalar_lea.sflag [#allocation7], %s432_s0  ;;  %s2496_s3 = scalar_lea.hbm %s2927_s15, 2048 }
  0xa5   : > { %p2497_p0 = scmp.ne.s32.totalorder %s2927_s15, %s2496_s3  ;;  %s2501_s14 = scalar_lea.hbm %s3500_s1, 4096 }
  0xa6   : > { %p2502_p6 = scmp.lt.u32.totalorder %s2927_s15, %s3500_s1  ;;  %p2503_p3 = scmp.lt.u32.totalorder %s2501_s14, %s2496_s3 }
  0xa7   : > { %p2499_p4 = pnand %p2497_p0, %p2468_p9  ;;  %p2505_p7 = scmp.lt.u32.totalorder %s2496_s3, %s2927_s15 }
  0xa8   : > { %p2504_p5 = por %p2503_p3, %p2502_p6 }
  0xa9   : > { %p2500_p8 = pneg %p2499_p4 }
  0xaa   : > { %p2506_p12 = por %p2505_p7, %p2504_p5 }
  0xac   : > { %p2507_p1 = pnand %p2506_p12, %p2500_p8 }
  0xae   : > { %2510 = shalt.err (!%p2507_p1)
}
  0xaf   : > { %s2511_s0 = scalar_lea.vmem %s2930_s12, 2048  ;;  %s2619_s16 = smov [#allocation6]  }
  0xb0   : > { %p2512_p2 = scmp.ne.s32.totalorder %s2930_s12, %s2511_s0  ;;  %s2516_s13 = sshll.u32 %s2619_s16, 4  ;;  %s2517_s13 = int_to_ptr.vmem [resolvable:$false] %s2516_s13 }
  0xb1   : > { %s2518_s10 = scalar_lea.vmem %s2517_s13, 4096  ;;  %p2519_p4 = scmp.lt.s32.totalorder %s2930_s12, %s2517_s13 }
  0xb2   : > { %p2514_p13 = pnand %p2512_p2, %p2468_p9  ;;  %p2520_p6 = scmp.lt.s32.totalorder %s2518_s10, %s2511_s0 }
  0xb4   : > { %p2515_p0 = pneg %p2514_p13  ;;  %p2521_p3 = por %p2520_p6, %p2519_p4 }
  0xb6   : > { %p2522_p5 = pnand %p2521_p3, %p2515_p0 }
  0xb8   : > { %2525 = shalt.err (!%p2522_p5)
}
  0xb9   : > { %2285 = dma.hbm_to_vmem [thread:$0]  (!%p2887_p11), %s2927_s15, 2048, %s2930_s12, %s2933_s2, %s2617_s9, %s2617_s9, %s2618_s22  }
  0xba   : > { %p3553_p9 = scmp.ne.s32.totalorder %s3544_s30, 0 }
  0xbc   : > { %455 = sbr.rel (%p3553_p9) target bundleno = 1337 (0x539), region = 68 }
  0xc3   : > { %s2965_s3 = sand.u32 1, %s2600_s24   ;;  %p3554_p8 = scmp.ne.s32.totalorder %s3541_s28, 0 }
  0xc4   : > { %s1855_s18 = sshll.u32 %s2965_s3, 7  ;;  %s458_s21 = scalar_lea.sflag [#allocation4], %s2965_s3 }
  0xc5   : > { %s2969_s14 = scalar_lea.vmem [#allocation3], %s1855_s18 }
  0xc6   : > { %2571 = dma.done.wait (%p3554_p8), %s458_s21, 2048  }
  0xc7   : > { %2573 = vsyncadd (%p3554_p8), %s458_s21, 4294965248  ;;  %s466_s2 = sand.u32 1, %s2715_s11   ;;  %s2976_s19 = scalar_lea.vmem [#allocation6], %s1855_s18 }
  0xc8   : > { %s467_s30 = scalar_lea.sflag [#allocation7], %s466_s2 }
  0xc9   : > { %2575 = dma.done.wait (%p3554_p8), %s467_s30, 2048  }
  0xca   : > { %2577 = vsyncadd (%p3554_p8), %s467_s30, 4294965248  ;;  %p3555_p11 = scmp.eq.s32.totalorder %s2715_s11, 0 }
  0xcc   : > { %2579 = dma.done.wait (%p3555_p11), [#allocation7], 1024   ;;  %p3556_p7 = pmov %p3555_p11 }
  0xce   : > { %2581 = vsyncadd (%p3556_p7), [#allocation7], 4294966272  ;;  %p3557_p12 = pmov %p3556_p7 }
  0xcf   : > { %p3558_p1 = pmov %p3556_p7 }
  0xd0   : > { %2583 = dma.done.wait (%p3557_p12), [#allocation10], 2048  }
  0xd1   : > { %2585 = vsyncadd (%p3558_p1), [#allocation10], 4294965248  ;;  %p3559_p2 = pmov %p3558_p1 }
  0xd2   : > { %p3560_p13 = pmov %p3558_p1 }
  0xd3   : > { %2587 = dma.done.wait (%p3559_p2), [#allocation13], 1024  }
  0xd4   : > { %2589 = vsyncadd (%p3560_p13), [#allocation13], 4294966272  ;;  %v2995_v1 = vld [vmem:[%s2976_s19 + $0x20] sm:$0xff]  ;;  %v2998_v2 = vld [vmem:[%s2976_s19 + $0x28] sm:$0xff]  ;;  %v3519_v53 = vmov 0.0|0.0   ;;  %vm2621_vm0 = vmmov 0  }
  0xd5   : > { %v3001_v3 = vld [vmem:[%s2976_s19] sm:$0xff]  ;;  %v602_v4 = vadd.f32 %v2998_v2, %v2995_v1  ;;  %v3006_v5 = vld [vmem:[%s2976_s19 + $0x8] sm:$0xff]  ;;  %v3009_v6 = vld [vmem:[%s2976_s19 + $0x30] sm:$0xff]  ;;  %2106 = vmatprep.subr.bf16.mxu1 %v3519_v53  ;;  %2130 = vmatprep.subr.bf16.mxu0 %v3519_v53  ;;  %vm730_vm1 = vcmask 130112   ;;  %vm737_vm2 = vcmask 195712   ;;  %vm744_vm3 = vcmask 261312  }
  0xd6   : > { %v3012_v7 = vld [vmem:[%s2976_s19 + $0x38] sm:$0xff]  ;;  %v596_v8 = vadd.f32 %v3006_v5, %v3001_v3  ;;  %v3019_v10 = vld [vmem:[%s2976_s19 + $0x10] sm:$0xff]  ;;  %v3032_v15 = vld [vmem:[%s2976_s19 + $0x40] sm:$0xff]  ;;  %vm751_vm4 = vcmask 326912   ;;  %vm758_vm5 = vcmask 392512   ;;  %vm765_vm6 = vcmask 458112  }
  0xd7   : > { %v3022_v11 = vld [vmem:[%s2976_s19 + $0x18] sm:$0xff]  ;;  %603 = vadd.xlane.f32.xlu1 %v602_v4  ;;  %v605_v12 = vadd.f32 %v3012_v7, %v3009_v6  ;;  %v3029_v14 = vld [vmem:[%s2976_s19 + $0x50] sm:$0xff]  ;;  %v3045_v20 = vld [vmem:[%s2976_s19 + $0x60] sm:$0xff]  ;;  %vm772_vm7 = vcmask 523712   ;;  %vm774_vm8 = vcmask 523264   ;;  %s3577_s16 = sld [smem:[#allocation37_spill]] }
  0xd8   : > { %597 = vadd.xlane.f32.xlu0 %v596_v8  ;;  %v599_v16 = vadd.f32 %v3022_v11, %v3019_v10  ;;  %v3037_v17 = vld [vmem:[%s2976_s19 + $0x58] sm:$0xff]  ;;  %v3042_v19 = vld [vmem:[%s2976_s19 + $0x70] sm:$0xff]  ;;  %v3048_v21 = vld [vmem:[%s2976_s19 + $0x48] sm:$0xff]  ;;  %s3588_s18 = sld [smem:[#allocation36_spill]]  ;;  %s1861_s21 = sshll.u32 %s2965_s3, 1 }
  0xd9   : > { %v3053_v23 = vld [vmem:[%s2969_s14 + $0x10] sm:$0xff]  ;;  %v3056_v24 = vld [vmem:[%s2969_s14] sm:$0xff]  ;;  %v611_v25 = vadd.f32 %v3037_v17, %v3029_v14  ;;  %v608_v29 = vadd.f32 %v3048_v21, %v3032_v15  ;;  %v3071_v30 = vld [vmem:[%s2976_s19 + $0x78] sm:$0xff]  ;;  %s531_s2 = scalar_lea.vmem [#allocation14], %s1861_s21  ;;  %s3594_s9 = sld [smem:[#allocation38_spill]] }
  0xda   : > { %v3063_v27 = vld [vmem:[%s2969_s14 + $0x20] sm:$0xff]  ;;  %v3066_v28 = vld [vmem:[%s2969_s14 + $0x30] sm:$0xff]  ;;  %v3082_v34 = vld [vmem:[%s2976_s19 + $0x68] sm:$0xff]  ;;  %v617_v38 = vadd.f32 %v3071_v30, %v3042_v19  ;;  %s1710_s30 = sshll.u32 %s531_s2, 4  ;;  %s1696_s15 = scalar_lea.sflag [#allocation5], %s2965_s3  ;;  %s3457_s30 = int_to_ptr.vmem [resolvable:$true] %s1710_s30 }
  0xdb   : > { %606 = vadd.xlane.f32.xlu1 %v605_v12  ;;  %3561 = vst [vmem:[#allocation23_spill] sm:$0xff] %v3063_v27  ;;  %3562 = vst [vmem:[#allocation24_spill] sm:$0xff] %v3066_v28  ;;  %v3076_v32 = vld [vmem:[%s2969_s14 + $0x40] sm:$0xff]  ;;  %v3079_v33 = vld [vmem:[%s2969_s14 + $0x50] sm:$0xff]  ;;  %v614_v40 = vadd.f32 %v3082_v34, %v3045_v20  ;;  %s2526_s12 = scalar_lea.vmem %s3457_s30, 32 }
  0xdc   : > { %600 = vadd.xlane.f32.xlu0 %v599_v16  ;;  %3563 = vst [vmem:[#allocation25_spill] sm:$0xff] %v3076_v32  ;;  %3564 = vst [vmem:[#allocation26_spill] sm:$0xff] %v3079_v33  ;;  %v3087_v36 = vld [vmem:[%s2969_s14 + $0x60] sm:$0xff]  ;;  %v3090_v37 = vld [vmem:[%s2969_s14 + $0x70] sm:$0xff]  ;;  %p2527_p0 = scmp.ne.s32.totalorder %s3457_s30, %s2526_s12 }
  0xdd   : > { %3565 = vst [vmem:[#allocation27_spill] sm:$0xff] %v3087_v36  ;;  %3566 = vst [vmem:[#allocation28_spill] sm:$0xff] %v3090_v37  ;;  %v3099_v41 = vld [vmem:[%s2969_s14 + $0x18] sm:$0xff]  ;;  %v3102_v42 = vld [vmem:[%s2969_s14 + $0x8] sm:$0xff] }
  0xde   : > { %v567_v43 = vadd.f32 %v3099_v41, %v3053_v23  ;;  %v564_v44 = vadd.f32 %v3102_v42, %v3056_v24  ;;  %v3109_v45 = vld [vmem:[%s2969_s14 + $0x38] sm:$0xff]  ;;  %v3112_v46 = vld [vmem:[%s2969_s14 + $0x28] sm:$0xff]  ;;  %v684_v47 = vld [vmem:[#allocation9] sm:$0xff]  ;;  %p2528_p4 = pnand %p2527_p0, %p2865_p10 }
  0xdf   : > { %612 = vadd.xlane.f32.xlu1 %v611_v25  ;;  %v685_v48 = vld [vmem:[#allocation9 + $0x8] sm:$0xff]  ;;  %v573_v49 = vadd.f32 %v3109_v45, %v3066_v28  ;;  %v570_v51 = vadd.f32 %v3112_v46, %v3063_v27  ;;  %v3121_v52 = vld [vmem:[%s2969_s14 + $0x58] sm:$0xff]  ;;  %v686_v55 = vld [vmem:[#allocation9 + $0x10] sm:$0xff] }
  0xe0   : > { %609 = vadd.xlane.f32.xlu0 %v608_v29  ;;  %v3116_v50 = vpack.c.bf16 %v685_v48, %v684_v47  ;;  %3567 = vst [vmem:[#allocation29_spill] sm:$0xff] %v3121_v52  ;;  %v3125_v54 = vld [vmem:[%s2969_s14 + $0x48] sm:$0xff]  ;;  %v687_v56 = vld [vmem:[#allocation9 + $0x18] sm:$0xff]  ;;  %v579_v57 = vadd.f32 %v3121_v52, %v3079_v33  ;;  %v688_v62 = vld [vmem:[#allocation9 + $0x20] sm:$0xff]  ;;  %v3521_v29 = vmov 0.0   ;;  %v634_v47 = vmax.f32 %v3063_v27, %v3112_v46  ;;  %p2529_p6 = pneg %p2528_p4 }
  0xe1   : > { %v3132_v58 = vpack.c.bf16 %v687_v56, %v686_v55  ;;  %v576_v59 = vadd.f32 %v3125_v54, %v3076_v32  ;;  %v3137_v60 = vld [vmem:[%s2969_s14 + $0x78] sm:$0xff]  ;;  %v3140_v61 = vld [vmem:[%s2969_s14 + $0x68] sm:$0xff]  ;;  %v690_v12 = vld [vmem:[#allocation9 + $0x30] sm:$0xff]  ;;  %1970 = vmatprep.mubr.msk.f32.mxu1 %vm2621_vm0, %v3521_v29  ;;  %2008 = vmatprep.mubr.msk.f32.mxu0 %vm2621_vm0, %v3521_v29  ;;  %v658_v48 = vmax.f32 %v2995_v1, %v2998_v2  ;;  %s1881_s14 = sshll.u32 %s2715_s11, 5  ;;  %s2625_s11 = smov [#allocation14]  }
  0xe2   : > { %2108 = vmatpush3.bf16.msra.mxu1 %v3116_v50  ;;  %3568 = vst [vmem:[#allocation30_spill] sm:$0xff] %v3137_v60  ;;  %3569 = vst [vmem:[#allocation31_spill] sm:$0xff] %v3140_v61  ;;  %v689_v63 = vld [vmem:[#allocation9 + $0x28] sm:$0xff]  ;;  %v585_v0 = vadd.f32 %v3137_v60, %v3090_v37  ;;  %v582_v8 = vadd.f32 %v3140_v61, %v3087_v36  ;;  %v691_v16 = vld [vmem:[#allocation9 + $0x38] sm:$0xff]  ;;  %v640_v55 = vmax.f32 %v3076_v32, %v3125_v54  ;;  %s3455_s22 = scalar_lea.hbm %s3594_s9, %s1881_s14  ;;  %s2530_s17 = sshll.u32 %s2625_s11, 4  ;;  %s2531_s17 = int_to_ptr.vmem [resolvable:$false] %s2530_s17 }
  0xe3   : > { %618 = vadd.xlane.f32.xlu1 %v617_v38  ;;  %2109 = vmatprep.subr.bf16.mxu1 %v3519_v53  ;;  %v3146_v4 = vpack.c.bf16 %v689_v63, %v688_v62  ;;  %v3152_v25 = vpack.c.bf16 %v691_v16, %v690_v12  ;;  %v628_v38 = vmax.f32 %v3056_v24, %v3102_v42  ;;  %v3518_v12 = vlaneseq  ;;  %s2532_s20 = scalar_lea.vmem %s2531_s17, 64  ;;  %p2533_p3 = scmp.lt.s32.totalorder %s3457_s30, %s2531_s17 }
  0xe4   : > { %615 = vadd.xlane.f32.xlu0 %v614_v40  ;;  %v631_v40 = vmax.f32 %v3053_v23, %v3099_v41  ;;  %v664_v56 = vmax.f32 %v3032_v15, %v3048_v21  ;;  %v646_v62 = vmax.f32 %v3087_v36, %v3140_v61  ;;  %v670_v63 = vmax.f32 %v3045_v20, %v3082_v34  ;;  %p2534_p5 = scmp.lt.s32.totalorder %s2532_s20, %s2526_s12 }
  0xe5   : > { %v720_v16 = vand.u32 127, %v3518_v12 }
  0xe6   : > { %2111 = vmatpush3.bf16.msra.mxu1 %v3132_v58  ;;  %p2535_p9 = por %p2534_p5, %p2533_p3 }
  0xe7   : > { %568 = vadd.xlane.f32.xlu1 %v567_v43  ;;  %2112 = vmatprep.subr.bf16.mxu1 %v3519_v53  ;;  %v652_v43 = vmax.f32 %v3001_v3, %v3006_v5 }
  0xe8   : > { %565 = vadd.xlane.f32.xlu0 %v564_v44  ;;  %v655_v44 = vmax.f32 %v3019_v10, %v3022_v11  ;;  %p2536_p8 = pnand %p2535_p9, %p2529_p6 }
  0xea   : > { %2114 = vmatpush3.bf16.msra.mxu1 %v3146_v4 }
  0xeb   : > { %574 = vadd.xlane.f32.xlu1 %v573_v49  ;;  %2115 = vmatprep.subr.bf16.mxu1 %v3519_v53  ;;  %v637_v49 = vmax.f32 %v3066_v28, %v3109_v45 }
  0xec   : > { %571 = vadd.xlane.f32.xlu0 %v570_v51  ;;  %v661_v51 = vmax.f32 %v3009_v6, %v3012_v7 }
  0xee   : > { %2117 = vmatpush3.bf16.msra.mxu1 %v3152_v25 }
  0xef   : > { %580 = vadd.xlane.f32.xlu1 %v579_v57  ;;  %2118 = vmatprep.subr.bf16.mxu1 %v3519_v53  ;;  %v643_v57 = vmax.f32 %v3079_v33, %v3121_v52 }
  0xf0   : > { %577 = vadd.xlane.f32.xlu0 %v576_v59  ;;  %v667_v59 = vmax.f32 %v3029_v14, %v3037_v17 }
  0xf3   : > { %586 = vadd.xlane.f32.xlu1 %v585_v0  ;;  %v649_v0 = vmax.f32 %v3090_v37, %v3137_v60 }
  0xf4   : > { %583 = vadd.xlane.f32.xlu0 %v582_v8  ;;  %v673_v8 = vmax.f32 %v3042_v19, %v3071_v30 }
  0xf7   : > { %632 = vmax.xlane.f32.xlu1 %v631_v40 }
  0xf8   : > { %629 = vmax.xlane.f32.xlu0 %v628_v38  ;;  %v3194_v38 = vshrl.u32 %v3518_v12, 7  ;;  %v753_v12 = vadd.s32 4294967256, %v720_v16 }
  0xfa   : > { %3570 = vst [vmem:[#allocation32_spill] sm:$0xff] %v3194_v38 }
  0xfb   : > { %656 = vmax.xlane.f32.xlu1 %v655_v44  ;;  %v725_v44 = vadd.s32 4294967288, %v720_v16 }
  0xfc   : > { %653 = vmax.xlane.f32.xlu0 %v652_v43  ;;  %v739_v43 = vadd.s32 4294967272, %v720_v16 }
  0xff   : > { %659 = vmax.xlane.f32.xlu1 %v658_v48 }
 0x100   : > { %635 = vmax.xlane.f32.xlu0 %v634_v47  ;;  %v732_v47 = vadd.s32 4294967280, %v720_v16 }
 0x103   : > { %662 = vmax.xlane.f32.xlu1 %v661_v51  ;;  %v3197_v51 = vsub.s32 %v720_v16, %v3194_v38 }
 0x104   : > { %638 = vmax.xlane.f32.xlu0 %v637_v49  ;;  %v746_v49 = vadd.s32 4294967264, %v720_v16 }
 0x106   : > { %v3209_v35 = vsub.s32 %v746_v49, %v3194_v38 }
 0x107   : > { %665 = vmax.xlane.f32.xlu1 %v664_v56  ;;  %v3200_v56 = vsub.s32 %v739_v43, %v3194_v38 }
 0x108   : > { %641 = vmax.xlane.f32.xlu0 %v640_v55 }
 0x10b   : > { %668 = vmax.xlane.f32.xlu1 %v667_v59  ;;  %v3203_v59 = vsub.s32 %v725_v44, %v3194_v38 }
 0x10c   : > { %644 = vmax.xlane.f32.xlu0 %v643_v57 }
 0x10f   : > { %671 = vmax.xlane.f32.xlu1 %v670_v63 }
 0x110   : > { %647 = vmax.xlane.f32.xlu0 %v646_v62  ;;  %v3206_v62 = vsub.s32 %v732_v47, %v3194_v38  ;;  %v760_v47 = vadd.s32 4294967248, %v720_v16 }
 0x113   : > { %674 = vmax.xlane.f32.xlu1 %v673_v8 }
 0x114   : > { %650 = vmax.xlane.f32.xlu0 %v649_v0 }
 0x164   : > { %v604_v40 = vpop.xlane.xlu1 %603 }
 0x165   : > { %v598_v48 = vpop.xlane.xlu0 %597  ;;  %v622_v63 = vmul.f32 0.00390625, %v604_v40 }
 0x166   : > { %v620_v55 = vmul.f32 0.00390625, %v598_v48  ;;  %v767_v48 = vadd.s32 4294967240, %v720_v16 }
 0x167   : > { %v736_v40 = vrot.slane %v622_v63, %v3206_v62 }
 0x168   : > { %v607_v57 = vpop.xlane.xlu1 %606  ;;  %v724_v43 = vrot.slane %v620_v55, %v3197_v51  ;;  %v3221_v55 = vsub.s32 %v767_v48, %v3194_v38 }
 0x169   : > { %v623_v0 = vmul.f32 0.00390625, %v607_v57  ;;  %v601_v8 = vpop.xlane.xlu0 %600  ;;  %v3216_v57 = vsub.s32 %v753_v12, %v3194_v38  ;;  %v3226_v12 = vsub.s32 %v760_v47, %v3194_v38  ;;  %v683_v38 = vld [vmem:[#allocation8 + $0x38] sm:$0xff] }
 0x16a   : > { %v621_v39 = vmul.f32 0.00390625, %v601_v8 }
 0x16b   : > { %v743_v31 = vrot.slane %v623_v0, %v3200_v56 }
 0x16c   : > { %v729_v44 = vrot.slane %v621_v39, %v3203_v59  ;;  %v613_v26 = vpop.xlane.xlu1 %612 }
 0x16d   : > { %v625_v8 = vmul.f32 0.00390625, %v613_v26  ;;  %v610_v22 = vpop.xlane.xlu0 %609 }
 0x16e   : > { %v731_v49 = vsel %vm730_vm1, %v729_v44, %v724_v43  ;;  %v624_v18 = vmul.f32 0.00390625, %v610_v22  ;;  %v676_v44 = vld [vmem:[#allocation8] sm:$0xff] }
 0x16f   : > { %v738_v9 = vsel %vm737_vm2, %v736_v40, %v731_v49  ;;  %v757_v26 = vrot.slane %v625_v8, %v3216_v57  ;;  %v677_v40 = vld [vmem:[#allocation8 + $0x8] sm:$0xff] }
 0x170   : > { %v745_v39 = vsel %vm744_vm3, %v743_v31, %v738_v9  ;;  %v750_v16 = vrot.slane %v624_v18, %v3209_v35  ;;  %v619_v63 = vpop.xlane.xlu1 %618  ;;  %v3233_v8 = vpack.c.bf16 %v677_v40, %v676_v44 }
 0x171   : > { %v627_v0 = vmul.f32 0.00390625, %v619_v63  ;;  %v616_v13 = vpop.xlane.xlu0 %615 }
 0x172   : > { %v752_v22 = vsel %vm751_vm4, %v750_v16, %v745_v39  ;;  %v626_v43 = vmul.f32 0.00390625, %v616_v13  ;;  %v678_v39 = vld [vmem:[#allocation8 + $0x10] sm:$0xff]  ;;  %v679_v16 = vld [vmem:[#allocation8 + $0x18] sm:$0xff] }
 0x173   : > { %v771_v48 = vrot.slane %v627_v0, %v3221_v55  ;;  %v759_v49 = vsel %vm758_vm5, %v757_v26, %v752_v22  ;;  %v3241_v44 = vpack.c.bf16 %v679_v16, %v678_v39 }
 0x174   : > { %v764_v9 = vrot.slane %v626_v43, %v3226_v12  ;;  %v569_v18 = vpop.xlane.xlu1 %568 }
 0x175   : > { %v589_v31 = vmul.f32 0.00390625, %v569_v18  ;;  %v566_v47 = vpop.xlane.xlu0 %565 }
 0x176   : > { %v588_v63 = vmul.f32 0.00390625, %v566_v47  ;;  %v766_v13 = vsel %vm765_vm6, %v764_v9, %v759_v49  ;;  %v3571_v9 = vmov 0.0|0.0   ;;  %v681_v47 = vld [vmem:[#allocation8 + $0x28] sm:$0xff] }
 0x177   : > { %v773_v53 = vsel %vm772_vm7, %v771_v48, %v766_v13  ;;  %v862_v43 = vrot.slane %v589_v31, %v3203_v59  ;;  %v680_v48 = vld [vmem:[#allocation8 + $0x20] sm:$0xff] }
 0x178   : > { %1971 = vmatmul.mubr.msk.f32.vlgmr.msra.gmra.mrb[0].mxu1 %vm774_vm8, %v773_v53  ;;  %v575_v0 = vpop.xlane.xlu1 %574  ;;  %v858_v18 = vrot.slane %v588_v63, %v3197_v51  ;;  %v3250_v16 = vpack.c.bf16 %v681_v47, %v680_v48 }
 0x179   : > { %2120 = vmatpush3.bf16.msra.mxu1 %v3233_v8  ;;  %v572_v26 = vpop.xlane.xlu0 %571  ;;  %v591_v22 = vmul.f32 0.00390625, %v575_v0  ;;  %1989 = vmatprep.mubr.msk.f32.mxu1 %vm2621_vm0, %v3521_v29  ;;  %v682_v29 = vld [vmem:[#allocation8 + $0x30] sm:$0xff] }
 0x17a   : > { %v590_v40 = vmul.f32 0.00390625, %v572_v26  ;;  %2121 = vmatprep.subr.bf16.mxu1 %v3571_v9  ;;  %v863_v31 = vsel %vm730_vm1, %v862_v43, %v858_v18  ;;  %v3258_v48 = vpack.c.bf16 %v683_v38, %v682_v29  ;;  %v3572_v29 = vmov 0.0  }
 0x17b   : > { %v872_v63 = vrot.slane %v591_v22, %v3200_v56 }
 0x17c   : > { %v867_v53 = vrot.slane %v590_v40, %v3206_v62  ;;  %v581_v49 = vpop.xlane.xlu1 %580 }
 0x17d   : > { %2123 = vmatpush3.bf16.msra.mxu1 %v3241_v44  ;;  %v578_v13 = vpop.xlane.xlu0 %577  ;;  %v593_v39 = vmul.f32 0.00390625, %v581_v49 }
 0x17e   : > { %v868_v0 = vsel %vm737_vm2, %v867_v53, %v863_v31  ;;  %v592_v26 = vmul.f32 0.00390625, %v578_v13  ;;  %2124 = vmatprep.subr.bf16.mxu1 %v3571_v9 }
 0x17f   : > { %v873_v43 = vsel %vm744_vm3, %v872_v63, %v868_v0  ;;  %v882_v18 = vrot.slane %v593_v39, %v3216_v57 }
 0x180   : > { %v877_v40 = vrot.slane %v592_v26, %v3209_v35  ;;  %v587_v36 = vpop.xlane.xlu1 %586 }
 0x181   : > { %2126 = vmatpush3.bf16.msra.mxu1 %v3250_v16  ;;  %v584_v22 = vpop.xlane.xlu0 %583  ;;  %v595_v49 = vmul.f32 0.00390625, %v587_v36 }
 0x182   : > { %v878_v47 = vsel %vm751_vm4, %v877_v40, %v873_v43  ;;  %v594_v53 = vmul.f32 0.00390625, %v584_v22  ;;  %2127 = vmatprep.subr.bf16.mxu1 %v3571_v9 }
 0x183   : > { %v892_v31 = vrot.slane %v595_v49, %v3221_v55  ;;  %v883_v26 = vsel %vm758_vm5, %v882_v18, %v878_v47 }
 0x184   : > { %v887_v13 = vrot.slane %v594_v53, %v3226_v12  ;;  %v633_v39 = vpop.xlane.xlu1 %632 }
 0x185   : > { %2129 = vmatpush3.bf16.msra.mxu1 %v3258_v48  ;;  %v630_v38 = vpop.xlane.xlu0 %629  ;;  %v1245_v40 = vrot.slane %v633_v39, %v3203_v59  ;;  %v693_v39 = vld [vmem:[#allocation11] sm:$0xff] }
 0x186   : > { %v888_v63 = vsel %vm765_vm6, %v887_v13, %v883_v26  ;;  %2142 = vmatprep.subr.bf16.mxu1 %v3571_v9  ;;  %v1241_v0 = vrot.slane %v630_v38, %v3197_v51 }
 0x187   : > { %v893_v36 = vsel %vm772_vm7, %v892_v31, %v888_v63 }
 0x188   : > { %1990 = vmatmul.mubr.msk.f32.vlgmr.msra.gmra.mrb[2].mxu1 %vm774_vm8, %v893_v36  ;;  %v1246_v43 = vsel %vm730_vm1, %v1245_v40, %v1241_v0  ;;  %v657_v22 = vpop.xlane.xlu1 %656  ;;  %v694_v0 = vld [vmem:[#allocation11 + $0x8] sm:$0xff]  ;;  %v701_v40 = vld [vmem:[#allocation12] sm:$0xff] }
 0x189   : > { %2027 = vmatprep.mubr.msk.f32.mxu1 %vm2621_vm0, %v3572_v29  ;;  %v654_v18 = vpop.xlane.xlu0 %653  ;;  %v1126_v47 = vrot.slane %v657_v22, %v3203_v59  ;;  %v702_v59 = vld [vmem:[#allocation12 + $0x8] sm:$0xff]  ;;  %v696_v22 = vld [vmem:[#allocation11 + $0x18] sm:$0xff] }
 0x18a   : > { %v1122_v49 = vrot.slane %v654_v18, %v3197_v51  ;;  %v3286_v51 = vpack.c.bf16 %v694_v0, %v693_v39  ;;  %v695_v18 = vld [vmem:[#allocation11 + $0x10] sm:$0xff] }
 0x18c   : > { %v1127_v53 = vsel %vm730_vm1, %v1126_v47, %v1122_v49  ;;  %v660_v13 = vpop.xlane.xlu1 %659  ;;  %v3288_v49 = vpack.c.bf16 %v702_v59, %v701_v40  ;;  %v703_v47 = vld [vmem:[#allocation12 + $0x10] sm:$0xff]  ;;  %2132 = vmatpush3.bf16.msra.mxu0 %v3286_v51  ;;  %v700_v59 = vld [vmem:[#allocation11 + $0x38] sm:$0xff] }
 0x18d   : > { %v636_v31 = vpop.xlane.xlu0 %635  ;;  %v1131_v63 = vrot.slane %v660_v13, %v3206_v62  ;;  %2133 = vmatprep.subr.bf16.mxu0 %v3571_v9  ;;  %v698_v13 = vld [vmem:[#allocation11 + $0x28] sm:$0xff]  ;;  %v699_v40 = vld [vmem:[#allocation11 + $0x30] sm:$0xff] }
 0x18e   : > { %v1250_v26 = vrot.slane %v636_v31, %v3206_v62  ;;  %v704_v31 = vld [vmem:[#allocation12 + $0x18] sm:$0xff]  ;;  %v3291_v62 = vpack.c.bf16 %v696_v22, %v695_v18  ;;  %2144 = vmatpush3.bf16.msra.mxu1 %v3288_v49  ;;  %v707_v18 = vld [vmem:[#allocation12 + $0x30] sm:$0xff]  ;;  %v3310_v22 = vpack.c.bf16 %v700_v59, %v699_v40 }
 0x18f   : > { %v3284_v38 = vsel %vm737_vm2, %v1131_v63, %v1127_v53  ;;  %v697_v53 = vld [vmem:[#allocation11 + $0x20] sm:$0xff]  ;;  %2145 = vmatprep.subr.bf16.mxu1 %v3571_v9  ;;  %v706_v63 = vld [vmem:[#allocation12 + $0x28] sm:$0xff]  ;;  %v3321_v40 = vld [vmem:[%s3503_s4] sm:$0x1] }
 0x190   : > { %v3281_v36 = vsel %vm737_vm2, %v1250_v26, %v1246_v43  ;;  %v3295_v43 = vpack.c.bf16 %v704_v31, %v703_v47  ;;  %v705_v26 = vld [vmem:[#allocation12 + $0x20] sm:$0xff]  ;;  %2135 = vmatpush3.bf16.msra.mxu0 %v3291_v62  ;;  %v3299_v39 = vpack.c.bf16 %v698_v13, %v697_v53  ;;  %v708_v47 = vld [vmem:[#allocation12 + $0x38] sm:$0xff] }
 0x191   : > { %2136 = vmatprep.subr.bf16.mxu0 %v3571_v9  ;;  %v3303_v0 = vpack.c.bf16 %v706_v63, %v705_v26  ;;  %v3312_v31 = vpack.c.bf16 %v708_v47, %v707_v18  ;;  %v639_v26 = vpop.xlane.xlu0 %638  ;;  %v663_v63 = vpop.xlane.xlu1 %662 }
 0x192   : > { %2147 = vmatpush3.bf16.msra.mxu1 %v3295_v43  ;;  %v1255_v28 = vrot.slane %v639_v26, %v3200_v56 }
 0x193   : > { %2148 = vmatprep.subr.bf16.mxu1 %v3571_v9 }
 0x194   : > { %2138 = vmatpush3.bf16.msra.mxu0 %v3299_v39 }
 0x195   : > { %2139 = vmatprep.subr.bf16.mxu0 %v3571_v9  ;;  %v642_v37 = vpop.xlane.xlu0 %641  ;;  %v666_v32 = vpop.xlane.xlu1 %665 }
 0x196   : > { %2150 = vmatpush3.bf16.msra.mxu1 %v3303_v0 }
 0x197   : > { %2151 = vmatprep.subr.bf16.mxu1 %v3571_v9 }
 0x198   : > { %2141 = vmatpush3.bf16.msra.mxu0 %v3310_v22 }
 0x199   : > { %2154 = vmatprep.subr.bf16.mxu0 %v3571_v9  ;;  %v645_v33 = vpop.xlane.xlu0 %644  ;;  %v669_v60 = vpop.xlane.xlu1 %668 }
 0x19a   : > { %2153 = vmatpush3.bf16.msra.mxu1 %v3312_v31 }
 0x19b   : > { %2166 = vmatprep.subr.bf16.mxu1 %v3571_v9 }
 0x19d   : > { %v672_v52 = vpop.xlane.xlu1 %671 }
 0x24b   : > { %v843_v53 = vpop.f32.mrb[0].mxu1 }
 0x24c   : > { %v1972_v13 = vpop.f32.mrb[1].mxu1 }
 0x24d   : > { %v1136_v13 = vrot.slane %v663_v63, %v3200_v56  ;;  %v1151_v56 = vrot.slane %v672_v52, %v3226_v12  ;;  %v1510_v63 = vld [vmem:[%s3577_s16] sm:$0x1] }
 0x25b   : > { %v962_v59 = vpop.f32.mrb[2].mxu1 }
 0x25c   : > { %v963_v18 = vadd.f32 %v962_v59, %v843_v53  ;;  %v1991_v47 = vpop.f32.mrb[3].mxu1  ;;  %v1260_v53 = vrot.slane %v642_v37, %v3209_v35  ;;  %v1141_v59 = vrot.slane %v666_v32, %v3209_v35  ;;  %v1265_v32 = vrot.slane %v645_v33, %v3216_v57  ;;  %v675_v33 = vpop.xlane.xlu1 %674 }
 0x25d   : > { %v648_v47 = vpop.xlane.xlu0 %647  ;;  %v1146_v35 = vrot.slane %v669_v60, %v3216_v57 }
 0x25e   : > { %v966_v61 = vadd.f32 %v963_v18, %v3321_v40 }
 0x260   : > { %v967_v27 = vmax.f32 %v966_v61, 0.0  ;;  %v1256_v61 = vsel %vm744_vm3, %v1255_v28, %v3281_v36 }
 0x261   : > { %v1261_v37 = vsel %vm751_vm4, %v1260_v53, %v1256_v61  ;;  %v2222_v53 = vpack.c.bf16 %v3109_v45, %v3112_v46  ;;  %v3583_v45 = vld [vmem:[#allocation31_spill] sm:$0xff]  ;;  %v3584_v46 = vld [vmem:[#allocation30_spill] sm:$0xff] }
 0x262   : > { %2009 = vmatmul.mubr.msk.f32.vlgmr.msra.gmra.mrb[0].mxu0 %vm774_vm8, %v967_v27  ;;  %2028 = vmatmul.mubr.msk.f32.vlgmr.msra.gmra.mrb[4].mxu1 %vm774_vm8, %v967_v27  ;;  %v1137_v27 = vsel %vm744_vm3, %v1136_v13, %v3284_v38  ;;  %v1266_v60 = vsel %vm758_vm5, %v1265_v32, %v1261_v37  ;;  %v3581_v32 = vld [vmem:[#allocation23_spill] sm:$0xff]  ;;  %v2230_v37 = vpack.c.bf16 %v3584_v46, %v3583_v45 }
 0x263   : > { %2156 = vmatpush3.bf16.msra.mxu0 %v3116_v50  ;;  %2168 = vmatpush3.bf16.msra.mxu1 %v3233_v8  ;;  %v1142_v28 = vsel %vm751_vm4, %v1141_v59, %v1137_v27  ;;  %v1270_v50 = vrot.slane %v648_v47, %v3226_v12  ;;  %v651_v8 = vpop.xlane.xlu0 %650  ;;  %v3578_v59 = vpack.c.bf16 %v3053_v23, %v3056_v24  ;;  %v3579_v47 = vld [vmem:[#allocation29_spill] sm:$0xff]  ;;  %v3580_v27 = vld [vmem:[#allocation24_spill] sm:$0xff]  ;;  %v1508_v24 = vld [vmem:[%s3588_s18] sm:$0x1] }
 0x264   : > { %2157 = vmatprep.subr.bf16.mxu0 %v3571_v9  ;;  %2169 = vmatprep.subr.bf16.mxu1 %v3571_v9  ;;  %v1275_v57 = vrot.slane %v651_v8, %v3221_v55  ;;  %v2226_v61 = vpack.c.bf16 %v3579_v47, %v3125_v54  ;;  %v3589_v54 = vld [vmem:[#allocation28_spill] sm:$0xff] }
 0x265   : > { %2046 = vmatprep.mubr.msk.f32.mxu0 %vm2621_vm0, %v3572_v29  ;;  %2065 = vmatprep.mubr.msk.f32.mxu1 %vm2621_vm0, %v3572_v29  ;;  %v1271_v52 = vsel %vm765_vm6, %v1270_v50, %v1266_v60  ;;  %v3586_v50 = vld [vmem:[#allocation25_spill] sm:$0xff]  ;;  %v3592_v60 = vld [vmem:[#allocation32_spill] sm:$0xff] }
 0x267   : > { %2159 = vmatpush3.bf16.msra.mxu0 %v3132_v58  ;;  %2171 = vmatpush3.bf16.msra.mxu1 %v3241_v44  ;;  %v1147_v58 = vsel %vm758_vm5, %v1146_v35, %v1142_v28  ;;  %v1156_v44 = vrot.slane %v675_v33, %v3221_v55  ;;  %v3582_v35 = vpack.c.bf16 %v3580_v27, %v3581_v32  ;;  %v3585_v28 = vld [vmem:[#allocation26_spill] sm:$0xff] }
 0x268   : > { %2160 = vmatprep.subr.bf16.mxu0 %v3571_v9  ;;  %2172 = vmatprep.subr.bf16.mxu1 %v3571_v9  ;;  %v1152_v12 = vsel %vm765_vm6, %v1151_v56, %v1147_v58  ;;  %v3587_v56 = vpack.c.bf16 %v3585_v28, %v3586_v50  ;;  %v1668_v58 = vsub.s32 0, %v3592_v60 }
 0x26b   : > { %2162 = vmatpush3.bf16.msra.mxu0 %v3146_v4  ;;  %2174 = vmatpush3.bf16.msra.mxu1 %v3250_v16  ;;  %v1276_v4 = vsel %vm772_vm7, %v1275_v57, %v1271_v52  ;;  %v1157_v16 = vsel %vm772_vm7, %v1156_v44, %v1152_v12  ;;  %v2624_v44 = vmov 1966171168  }
 0x26c   : > { %2163 = vmatprep.subr.bf16.mxu0 %v3571_v9  ;;  %2175 = vmatprep.subr.bf16.mxu1 %v3571_v9  ;;  %v1676_v52 = vunpack.c.l.s4 %v2624_v44 }
 0x26f   : > { %2165 = vmatpush3.bf16.msra.mxu0 %v3152_v25  ;;  %2177 = vmatpush3.bf16.msra.mxu1 %v3258_v48 }
 0x270   : > { %2178 = vmatprep.subr.bf16.mxu0 %v3571_v9  ;;  %2190 = vmatprep.subr.bf16.mxu1 %v3571_v9 }
 0x272   : > { %2047 = vmatmul.mubr.msk.f32.vlgmr.msra.gmra.mrb[2].mxu0 %vm774_vm8, %v1157_v16  ;;  %2066 = vmatmul.mubr.msk.f32.vlgmr.msra.gmra.mrb[6].mxu1 %vm774_vm8, %v1276_v4  ;;  %v1677_v4 = vunpack.c.0.s8 %v1676_v52 }
 0x273   : > { %2180 = vmatpush3.bf16.msra.mxu0 %v3286_v51  ;;  %2192 = vmatpush3.bf16.msra.mxu1 %v3288_v49 }
 0x274   : > { %2181 = vmatprep.subr.bf16.mxu0 %v3571_v9  ;;  %2193 = vmatprep.subr.bf16.mxu1 %v3571_v9 }
 0x275   : > { %2084 = vmatprep.mubr.msk.f32.mxu0 %vm2621_vm0, %v3572_v29  ;;  %2103 = vmatprep.mubr.msk.f32.mxu1 %vm2621_vm0, %v3572_v29 }
 0x277   : > { %2183 = vmatpush3.bf16.msra.mxu0 %v3291_v62  ;;  %2195 = vmatpush3.bf16.msra.mxu1 %v3295_v43  ;;  %v3573_v62 = vpack.c.bf16 %v3019_v10, %v3001_v3  ;;  %v2206_v43 = vpack.c.bf16 %v3012_v7, %v2998_v2  ;;  %v2218_v2 = vpack.c.bf16 %v3099_v41, %v3102_v42  ;;  %v1512_v7 = vld [vmem:[#allocation2] sm:$0x1] }
 0x278   : > { %2184 = vmatprep.subr.bf16.mxu0 %v3571_v9  ;;  %2196 = vmatprep.subr.bf16.mxu1 %v3571_v9  ;;  %v3576_v3 = vpack.c.bf16 %v3042_v19, %v3045_v20 }
 0x27b   : > { %2186 = vmatpush3.bf16.msra.mxu0 %v3299_v39  ;;  %2198 = vmatpush3.bf16.msra.mxu1 %v3303_v0  ;;  %v2210_v39 = vpack.c.bf16 %v3037_v17, %v3048_v21  ;;  %v3574_v0 = vpack.c.bf16 %v3009_v6, %v2995_v1  ;;  %v2623_v1 = vmov 0   ;;  %v710_v6 = vld [vmem:[%s3507_s8] sm:$0x1] }
 0x27c   : > { %2187 = vmatprep.subr.bf16.mxu0 %v3571_v9  ;;  %2199 = vmatprep.subr.bf16.mxu1 %v3571_v9  ;;  %v2202_v9 = vpack.c.bf16 %v3022_v11, %v3006_v5  ;;  %v2214_v5 = vpack.c.bf16 %v3071_v30, %v3082_v34  ;;  %v3575_v11 = vpack.c.bf16 %v3029_v14, %v3032_v15  ;;  %v709_v17 = vld [vmem:[%s3506_s7] sm:$0x1] }
 0x27d   : > { %2345 = vset.pattern.permute.xlu0 %v2623_v1  ;;  %v2236_v10 = vadd.f32 %v710_v6, %v710_v6  ;;  %v2234_v34 = vadd.f32 %v709_v17, %v709_v17 }
 0x27e   : > { %1663 = vperm.xlu0 %2345, %v1512_v7  }
 0x27f   : > { %2189 = vmatpush3.bf16.msra.mxu0 %v3310_v22  ;;  %2201 = vmatpush3.bf16.msra.mxu1 %v3312_v31 }
 0x280   : > { %2203 = vmatprep.subr.bf16.mxu0 %v2202_v9 }
 0x2fd   : > { %v1664_v57 = vpop.permute.xlu0 %1663 }
 0x2fe   : > { %v1669_v12 = vrot.slane %v1664_v57, %v1668_v58 }
 0x345   : > { %v1226_v25 = vpop.f32.mrb[2].mxu0  ;;  %v1345_v55 = vpop.f32.mrb[6].mxu1 }
 0x346   : > { %v1346_v48 = vadd.f32 %v1345_v55, %v1226_v25  ;;  %v2048_v36 = vpop.f32.mrb[3].mxu0  ;;  %v2067_v38 = vpop.f32.mrb[7].mxu1 }
 0x347   : > { %v1680_v36 = vsub.s32 %v1677_v4, %v3592_v60 }
 0x348   : > { %v1349_v51 = vadd.f32 %v1346_v48, %v3321_v40 }
 0x34a   : > { %v1350_v49 = vmax.f32 %v1349_v51, 0.0 }
 0x34c   : > { %2085 = vmatmul.mubr.msk.f32.vlgmr.msra.gmra.mrb[0].mxu0 %vm774_vm8, %v1350_v49  ;;  %2104 = vmatmul.mubr.msk.f32.vlgmr.msra.gmra.mrb[4].mxu1 %vm774_vm8, %v1350_v49  ;;  %v3593_v49 = vlaneseq }
 0x34d   : > { %1580 = vmatprep.mubr.f32.mxu0 %v3572_v29  ;;  %2205 = vmatpush1.bf16.msra.mxu0 %v3573_v62 }
 0x34e   : > { %2207 = vmatprep.subr.bf16.mxu0 %v2206_v43  ;;  %vm1692_vm9 = vcmp.lt.s32.totalorder %v3593_v49, 256 }
 0x351   : > { %2209 = vmatpush1.bf16.msra.mxu0 %v3574_v0 }
 0x352   : > { %2211 = vmatprep.subr.bf16.mxu0 %v2210_v39 }
 0x355   : > { %2213 = vmatpush1.bf16.msra.mxu0 %v3575_v11 }
 0x356   : > { %2215 = vmatprep.subr.bf16.mxu0 %v2214_v5 }
 0x359   : > { %2217 = vmatpush1.bf16.msra.mxu0 %v3576_v3 }
 0x35a   : > { %2219 = vmatprep.subr.bf16.mxu0 %v2218_v2 }
 0x41f   : > { %v1420_v14 = vpop.f32.mrb[0].mxu0  ;;  %v1490_v15 = vpop.f32.mrb[4].mxu1 }
 0x420   : > { %v2237_v21 = vadd.f32 %v2236_v10, %v1490_v15  ;;  %v2086_v30 = vpop.f32.mrb[1].mxu0  ;;  %v2105_v19 = vpop.f32.mrb[5].mxu1  ;;  %v2235_v41 = vadd.f32 %v2234_v34, %v1420_v14 }
 0x422   : > { %v1871_v20 = vmul.f32 -1.442695, %v2237_v21  ;;  %v1870_v42 = vmul.f32 -1.442695, %v2235_v41 }
 0x424   : > { %2346 = vpow2.f32 %v1871_v20 }
 0x425   : > { %2348 = vpow2.f32 %v1870_v42 }
 0x42e   : > { %v2347_v22 = vpop.eup %2346 }
 0x42f   : > { %v1505_v31 = vadd.f32 1.0, %v2347_v22  ;;  %v2349_v26 = vpop.eup %2348 }
 0x430   : > { %v1498_v18 = vadd.f32 1.0, %v2349_v26 }
 0x431   : > { %2350 = vrcp.f32 %v1505_v31 }
 0x432   : > { %2352 = vrcp.f32 %v1498_v18 }
 0x43b   : > { %v2351_v40 = vpop.eup %2350 }
 0x43c   : > { %v1511_v13 = vmul.f32 %v2351_v40, %v1510_v63  ;;  %v2353_v23 = vpop.eup %2352 }
 0x43d   : > { %v1509_v33 = vmul.f32 %v2353_v23, %v1508_v24 }
 0x43e   : > { %1872 = vmatmul.mubr.msk.f32.vlgmr.msra.gmra.mrb[4].mxu0 %vm774_vm8, %v1511_v13 }
 0x43f   : > { %2221 = vmatpush1.bf16.msra.mxu0 %v3578_v59  ;;  %1654 = vmatprep.mubr.f32.mxu0 %v3572_v29  ;;  %v3590_v29 = vld [vmem:[#allocation27_spill] sm:$0xff] }
 0x440   : > { %2223 = vmatprep.subr.bf16.mxu0 %v2222_v53  ;;  %v3591_v8 = vpack.c.bf16 %v3589_v54, %v3590_v29 }
 0x443   : > { %2225 = vmatpush1.bf16.msra.mxu0 %v3582_v35 }
 0x444   : > { %2227 = vmatprep.subr.bf16.mxu0 %v2226_v61 }
 0x447   : > { %2229 = vmatpush1.bf16.msra.mxu0 %v3587_v56 }
 0x448   : > { %2231 = vmatprep.subr.bf16.mxu0 %v2230_v37 }
 0x44b   : > { %2233 = vmatpush1.bf16.msra.mxu0 %v3591_v8 }
 0x44e   : > { %1873 = vmatmul.mubr.msk.f32.vlgmr.msra.gmra.mrb[4].mxu0 %vm774_vm8, %v1509_v33 }
 0x521   : > { %v1656_v16 = vpop.f32.mrb[4].mxu0 }
 0x522   : > { %v1670_v25 = vadd.f32 %v1669_v12, %v1656_v16  ;;  %v1658_v55 = vpop.f32.mrb[5].mxu0 }
 0x523   : > { %v1671_v48 = vadd.f32 %v1669_v12, %v1658_v55 }
 0x525   : > { %v1674_v38 = vcombine.low %v1670_v25, %v1671_v48 }
 0x527   : > { %v1681_v51 = vrot.slane %v1674_v38, %v1680_v36 }
 0x529   : > { %v1688_v9 = vrot.slane %v1681_v51, %v1680_v36 }
 0x52b   : > { %1694 = vst.msk [vmem:[%s531_s2] sm:$0x3] %vm1692_vm9, %v1688_v9 }
 0x52c   : > { %2539 = shalt.err (!%p2536_p8)
}
 0x52d   : > { %s2540_s3 = scalar_lea.hbm %s3455_s22, 32  ;;  %s2544_s13 = scalar_lea.hbm %s3594_s9, 64 }
 0x52e   : > { %p2541_p11 = scmp.ne.s32.totalorder %s3455_s22, %s2540_s3  ;;  %p2545_p1 = scmp.lt.u32.totalorder %s3455_s22, %s3594_s9 }
 0x52f   : > { %p2546_p2 = scmp.lt.u32.totalorder %s2544_s13, %s2540_s3  ;;  %p2548_p0 = scmp.lt.u32.totalorder %s2540_s3, %s3455_s22 }
 0x530   : > { %p2542_p7 = pnand %p2541_p11, %p2865_p10 }
 0x531   : > { %p2547_p13 = por %p2546_p2, %p2545_p1 }
 0x532   : > { %p2543_p12 = pneg %p2542_p7 }
 0x533   : > { %p2549_p4 = por %p2548_p0, %p2547_p13 }
 0x535   : > { %p2550_p6 = pnand %p2549_p4, %p2543_p12 }
 0x537   : > { %2553 = shalt.err (!%p2550_p6)
}
 0x538   : > { %2264 = dma.vmem_to_hbm [thread:$0]  (%p2865_p10), %s3457_s30, 32, %s3455_s22, %s1696_s15  }
 0x539 PF: > { %s3595_s21 = sld [smem:[#allocation21_spill]]  ;;  %s3596_s14 = sld [smem:[#allocation22_spill]] }
 0x53a   : > { %p3598_p5 = scmp.ge.s32.totalorder %s2608_s26, 2 }
 0x53f   : > { %s1722_s2 = sand.u32 1, %s3595_s21   ;;  %p3597_p3 = scmp.ne.s32.totalorder %s3596_s14, 0 }
 0x540   : > { %s1723_s19 = scalar_lea.sflag [#allocation5], %s1722_s2 }
 0x541   : > { %p2287_p9 = pnand %p3598_p5, %p3597_p3 }
 0x543   : > { %2591 = dma.done.wait (!%p2287_p9), %s1723_s19, 32  }
 0x544   : > { %2593 = vsyncadd (!%p2287_p9), %s1723_s19, 4294967264  ;;  %p32_p8 = scmp.ge.s32.totalorder %s2855_s29, 4   ;;  %s3599_s23 = smov %s2600_s24 }
 0x545   : > { %s3600_s24 = smov %s2604_s25  ;;  %s3601_s25 = smov %s2871_s27 }
 0x546   : > { %s3602_s26 = smov %s2855_s29  ;;  %34 = sbr.rel (!%p32_p8) target bundleno = 16 (0x10), region = 142 }
 0x54d   :  { %1728 = vsyncpa [#allocation4], 1 }
 0x54e   :  { %1730 = vsyncpa [#allocation4 + $0x1], 1 }
 0x54f   :  { %1731 = vsyncpa [#allocation7], 1 }
 0x550   :  { %1733 = vsyncpa [#allocation7 + $0x1], 1 }
 0x551   :  { %1734 = vsyncpa [#allocation10], 1 }
 0x552   :  { %1735 = vsyncpa [#allocation13], 1 }
 0x553   :  { %1736 = vsyncpa [#allocation5], 1 }
 0x554   :  { %1738 = vsyncpa [#allocation5 + $0x1], 1 }

</bundles_post_ra>
